<compile_context>
chip_gen: v6e
topology: v6e:2x2x1
jax: 0.10.0
libtpu: 0.0.40
codegen_flags: <defaults>
</compile_context>

<pallas_src>
import functools
import math

import jax
import jax.numpy as jnp
from jax.experimental import pallas as pl
from jax.experimental.pallas import tpu as pltpu


# ----------------------------- helpers ---------------------------------------
def _round_up(x, m):
    return (x + m - 1) // m * m


def _full_spec(shape):
    """BlockSpec covering the whole array (grid=(1,))."""
    nd = len(shape)
    return pl.BlockSpec(tuple(shape), lambda i, _nd=nd: (0,) * _nd)


# ------------------- conv GEMM: lane-dense, M-tiled, parallel ----------------
def _matmul_bias_relu_kernel(x_ref, w_ref, b_ref, o_ref):
    y = jnp.dot(x_ref[...], w_ref[...], preferred_element_type=jnp.float32)
    o_ref[...] = jnp.maximum(y + b_ref[...], 0.0)


def matmul_bias_relu(x, w, b, *, tm_max=512):
    """relu(x @ w + b).  x:(M,K), w:(K,N), b:(N,).  Pads K,N to 128, tiles M."""
    M, K = x.shape
    N = w.shape[1]
    Kp = _round_up(K, 128)
    Np = _round_up(N, 128)
    # TM capped well below VMEM limits on all generations (incl. v7x 64 MiB/TC).
    TM = min(tm_max, _round_up(M, 8))
    Mp = _round_up(M, TM)

    xp = jnp.pad(x, ((0, Mp - M), (0, Kp - K)))
    wp = jnp.pad(w, ((0, Kp - K), (0, Np - N)))
    bp = jnp.pad(b.reshape(1, N), ((0, 0), (0, Np - N)))

    out = pl.pallas_call(
        _matmul_bias_relu_kernel,
        grid=(Mp // TM,),
        out_shape=jax.ShapeDtypeStruct((Mp, Np), jnp.float32),
        in_specs=[pl.BlockSpec((TM, Kp), lambda i: (i, 0)),
                  pl.BlockSpec((Kp, Np), lambda i: (0, 0)),   # resident weights
                  pl.BlockSpec((1, Np), lambda i: (0, 0))],
        out_specs=pl.BlockSpec((TM, Np), lambda i: (i, 0)),
        compiler_params=pltpu.CompilerParams(
            dimension_semantics=("parallel",)),
    )(xp, wp, bp)
    return out[:M, :N]


def _im2col_nhwc(x, k, stride, pad):
    """x: (B, H, W, C) NHWC -> (B*Ho*Wo, k*k*C) patches, feature order (kh,kw,C)."""
    B, H, W, C = x.shape
    xp = jnp.pad(x, ((0, 0), (pad, pad), (pad, pad), (0, 0)))
    Ho = (H + 2 * pad - k) // stride + 1
    Wo = (W + 2 * pad - k) // stride + 1
    cols = []
    for i in range(k):
        for j in range(k):
            cols.append(xp[:, i:i + Ho * stride:stride, j:j + Wo * stride:stride, :])
    patches = jnp.stack(cols, axis=3)                       # (B, Ho, Wo, k*k, C)
    patches = patches.reshape(B * Ho * Wo, k * k * C)
    return patches, Ho, Wo


def conv2d_relu_nhwc(x, w, b, stride, pad):
    """NHWC conv; w keeps PyTorch layout (Cout, Cin, k, k)."""
    B = x.shape[0]
    Cout, Cin, k, _ = w.shape
    patches, Ho, Wo = _im2col_nhwc(x, k, stride, pad)
    wm = w.transpose(2, 3, 1, 0).reshape(k * k * Cin, Cout)  # (kh,kw,Cin) order
    y = matmul_bias_relu(patches, wm, b)                     # (B*Ho*Wo, Cout)
    return y.reshape(B, Ho, Wo, Cout)                        # stays NHWC


# ------------------- fused post-conv head (single pallas_call) ---------------
def _head_kernel(feat_ref, joints_ref, tid_ref,
                 imgw_ref, imgb_ref,
                 j1w_ref, j1b_ref, j2w_ref, j2b_ref,
                 tw_ref, tb_ref,
                 wq_ref, bq_ref, wk_ref, bk_ref, wv_ref, bv_ref, wo_ref, bo_ref,
                 g1_ref, be1_ref, f1w_ref, f1b_ref, f2w_ref, f2b_ref,
                 g2_ref, be2_ref,
                 c1w_ref, c1b_ref, c2w_ref, c2b_ref,
                 act_ref, *, num_tasks, eps=1e-5):
    f32 = jnp.float32

    def dot(a, b):
        return jnp.dot(a, b, preferred_element_type=f32)

    # ---- encoders ------------------------------------------------------------
    feat = feat_ref[...]                                  # (B, L, C2), C in lanes
    pooled = jnp.mean(feat, axis=1)                       # GAP -> (B, C2)
    img_e = dot(pooled, imgw_ref[...]) + imgb_ref[...]    # (B, E)

    jh = jnp.maximum(dot(joints_ref[...], j1w_ref[...]) + j1b_ref[...], 0.0)
    joint_e = dot(jh, j2w_ref[...]) + j2b_ref[...]        # (B, E)

    tid = tid_ref[...]                                    # (B, 1) int32
    onehot = (jax.lax.broadcasted_iota(jnp.int32, (tid.shape[0], num_tasks), 1)
              == tid).astype(f32)
    task_e = dot(onehot, tw_ref[...]) + tb_ref[...]       # (B, E)

    # ---- single-head attention over the 3 tokens -----------------------------
    B, E = img_e.shape
    S = 3
    t2 = jnp.concatenate([img_e, joint_e, task_e], axis=0)    # (S*B, E), token-major
    q = (dot(t2, wq_ref[...]) + bq_ref[...]).reshape(S, B, E)
    k = (dot(t2, wk_ref[...]) + bk_ref[...]).reshape(S, B, E)
    v = (dot(t2, wv_ref[...]) + bv_ref[...]).reshape(S, B, E)

    scale = 1.0 / math.sqrt(E)
    scores = jnp.einsum("sbe,tbe->bst", q, k,
                        preferred_element_type=f32) * scale   # (B, S, S)
    scores = scores - jnp.max(scores, axis=-1, keepdims=True)
    p = jnp.exp(scores)
    attn = p * pl.reciprocal(jnp.sum(p, axis=-1, keepdims=True), approx=True)
    ctx = jnp.einsum("bst,tbe->sbe", attn, v,
                     preferred_element_type=f32)              # (S, B, E)
    ctx = dot(ctx.reshape(S * B, E), wo_ref[...]) + bo_ref[...]

    # ---- residual + LayerNorm 1 ----------------------------------------------
    h = t2 + ctx
    mu = jnp.mean(h, axis=-1, keepdims=True)
    var = jnp.mean((h - mu) ** 2, axis=-1, keepdims=True)
    h = (h - mu) * jax.lax.rsqrt(var + eps) * g1_ref[...] + be1_ref[...]

    # ---- FFN + residual + LayerNorm 2 ----------------------------------------
    f = jnp.maximum(dot(h, f1w_ref[...]) + f1b_ref[...], 0.0)
    f = dot(f, f2w_ref[...]) + f2b_ref[...]
    o = h + f
    mu2 = jnp.mean(o, axis=-1, keepdims=True)
    var2 = jnp.mean((o - mu2) ** 2, axis=-1, keepdims=True)
    o = (o - mu2) * jax.lax.rsqrt(var2 + eps) * g2_ref[...] + be2_ref[...]

    # ---- pooled state embedding + controller ----------------------------------
    state = jnp.mean(o.reshape(S, B, E), axis=0)              # (B, E)
    ch = jnp.maximum(dot(state, c1w_ref[...]) + c1b_ref[...], 0.0)
    act_ref[...] = jnp.tanh(dot(ch, c2w_ref[...]) + c2b_ref[...])


def fused_head(p, feat, joints, target_id, num_tasks):
    """GAP + all encoders' fc layers + cross-attention BERT + controller, one call."""
    B = feat.shape[0]
    num_joints = p["ctrl_w2"].shape[1]
    r = lambda a: a.reshape(1, -1)
    inputs = (
        feat, joints, target_id.reshape(B, 1).astype(jnp.int32),
        p["img_fc_w"], r(p["img_fc_b"]),
        p["joint_fc1_w"], r(p["joint_fc1_b"]),
        p["joint_fc2_w"], r(p["joint_fc2_b"]),
        p["task_fc_w"], r(p["task_fc_b"]),
        p["wq"], r(p["bq"]), p["wk"], r(p["bk"]),
        p["wv"], r(p["bv"]), p["wo"], r(p["bo"]),
        r(p["ln1_g"]), r(p["ln1_b"]),
        p["ffn_w1"], r(p["ffn_b1"]), p["ffn_w2"], r(p["ffn_b2"]),
        r(p["ln2_g"]), r(p["ln2_b"]),
        p["ctrl_w1"], r(p["ctrl_b1"]), p["ctrl_w2"], r(p["ctrl_b2"]),
    )
    return pl.pallas_call(
        functools.partial(_head_kernel, num_tasks=num_tasks),
        grid=(1,),
        out_shape=jax.ShapeDtypeStruct((B, num_joints), jnp.float32),
        in_specs=[_full_spec(a.shape) for a in inputs],
        out_specs=_full_spec((B, num_joints)),
        compiler_params=pltpu.CompilerParams(
            dimension_semantics=("arbitrary",)),
    )(*inputs)


# ----------------------------- backbone forward -------------------------------
def backbone_forward(p, img, joints, target_id, num_tasks):
    # one-time NCHW -> NHWC (PyTorch convention at the interface), NHWC after.
    x = jnp.transpose(img, (0, 2, 3, 1))
    x = conv2d_relu_nhwc(x, p["conv1_w"], p["conv1_b"], stride=2, pad=1)
    x = conv2d_relu_nhwc(x, p["conv2_w"], p["conv2_b"], stride=2, pad=1)
    B, Ho, Wo, C = x.shape
    feat = x.reshape(B, Ho * Wo, C)                       # GAP happens in-kernel
    return fused_head(p, feat, joints, target_id, num_tasks)


# ----------------------------- parameter init ---------------------------------
def init_params(key, img_channels, num_joints, num_tasks, E):
    ks = jax.random.split(key, 16)

    def w(k, shape, fan_in):
        return jax.random.normal(k, shape, jnp.float32) / math.sqrt(fan_in)

    C1, C2, H = 8, 16, 4 * E
    p = {}
    p["conv1_w"] = w(ks[0], (C1, img_channels, 3, 3), img_channels * 9)
    p["conv1_b"] = jnp.zeros((C1,), jnp.float32)
    p["conv2_w"] = w(ks[1], (C2, C1, 3, 3), C1 * 9)
    p["conv2_b"] = jnp.zeros((C2,), jnp.float32)
    p["img_fc_w"] = w(ks[2], (C2, E), C2)
    p["img_fc_b"] = jnp.zeros((E,), jnp.float32)
    p["joint_fc1_w"] = w(ks[3], (num_joints, E), num_joints)
    p["joint_fc1_b"] = jnp.zeros((E,), jnp.float32)
    p["joint_fc2_w"] = w(ks[4], (E, E), E)
    p["joint_fc2_b"] = jnp.zeros((E,), jnp.float32)
    p["task_fc_w"] = w(ks[5], (num_tasks, E), num_tasks)
    p["task_fc_b"] = jnp.zeros((E,), jnp.float32)
    for i, name in enumerate(["wq", "wk", "wv", "wo"]):
        p[name] = w(ks[6 + i], (E, E), E)
        p["b" + name[1]] = jnp.zeros((E,), jnp.float32)
    p["ln1_g"] = jnp.ones((E,), jnp.float32)
    p["ln1_b"] = jnp.zeros((E,), jnp.float32)
    p["ffn_w1"] = w(ks[10], (E, H), E)
    p["ffn_b1"] = jnp.zeros((H,), jnp.float32)
    p["ffn_w2"] = w(ks[11], (H, E), H)
    p["ffn_b2"] = jnp.zeros((E,), jnp.float32)
    p["ln2_g"] = jnp.ones((E,), jnp.float32)
    p["ln2_b"] = jnp.zeros((E,), jnp.float32)
    p["ctrl_w1"] = w(ks[12], (E, E), E)
    p["ctrl_b1"] = jnp.zeros((E,), jnp.float32)
    p["ctrl_w2"] = w(ks[13], (E, num_joints), E)
    p["ctrl_b2"] = jnp.zeros((num_joints,), jnp.float32)
    return p


# ----------------------------- main -------------------------------------------
if __name__ == "__main__":
    B, img_size, num_joints, num_tasks, E = 2, 16, 7, 4, 32

    key = jax.random.PRNGKey(0)
    k_img, k_jnt, k_tid = jax.random.split(key, 3)
    img = jax.random.normal(k_img, (B, 3, img_size, img_size), jnp.float32)
    joints = jax.random.normal(k_jnt, (B, num_joints), jnp.float32)
    target_id = jax.random.randint(k_tid, (B,), 0, num_tasks)

    params = init_params(jax.random.PRNGKey(42), 3, num_joints, num_tasks, E)

    fwd = jax.jit(functools.partial(backbone_forward, num_tasks=num_tasks))
    action = fwd(params, img, joints, target_id)
    action = jax.block_until_ready(action)

    assert action.shape == (B, num_joints), action.shape
    assert bool(jnp.all(jnp.isfinite(action)))
    print("KERNEL_OK")
</pallas_src>

<mosaic_0001>
module attributes {stable_mosaic.version = 11 : i64} {
  func.func @_matmul_bias_relu_kernel(%arg0: i32, %arg1: memref<128x128xf32, #tpu.memory_space<vmem>>, %arg2: memref<128x128xf32, #tpu.memory_space<vmem>>, %arg3: memref<1x128xf32, #tpu.memory_space<vmem>>, %arg4: memref<128x128xf32, #tpu.memory_space<vmem>>) attributes {dimension_semantics = [#tpu.dimension_semantics<parallel>], iteration_bounds = array<i64: 1>, scalar_prefetch = 0 : i64, scratch_operands = 0 : i64, tpu.core_type = #tpu.core_type<tc>, window_params = [{transform_indices = @transform_0, window_bounds = array<i64: 128, 128>}, {pipeline_mode = #tpu.pipeline_mode<synchronous>, transform_indices = @transform_1, window_bounds = array<i64: 128, 128>}, {pipeline_mode = #tpu.pipeline_mode<synchronous>, transform_indices = @transform_2, window_bounds = array<i64: 1, 128>}, {transform_indices = @transform_3, window_bounds = array<i64: 128, 128>}]} {
    %c0 = arith.constant 0 : index
    %c0_0 = arith.constant 0 : index
    %0 = vector.load %arg1[%c0, %c0_0] : memref<128x128xf32, #tpu.memory_space<vmem>>, vector<128x128xf32>
    %c0_1 = arith.constant 0 : index
    %c0_2 = arith.constant 0 : index
    %1 = vector.load %arg2[%c0_1, %c0_2] : memref<128x128xf32, #tpu.memory_space<vmem>>, vector<128x128xf32>
    %cst = arith.constant dense<0.000000e+00> : vector<128x128xf32>
    %2 = tpu.matmul %0, %1, %cst {dimension_numbers = #tpu.dot_dimension_numbers<[1], [0], [0], [1], [0, 0, 1, 1], [], []>} : vector<128x128xf32>, vector<128x128xf32>, vector<128x128xf32> -> vector<128x128xf32>
    %c0_3 = arith.constant 0 : index
    %c0_4 = arith.constant 0 : index
    %3 = vector.load %arg3[%c0_3, %c0_4] : memref<1x128xf32, #tpu.memory_space<vmem>>, vector<1x128xf32>
    %4 = vector.broadcast %3 : vector<1x128xf32> to vector<128x128xf32>
    %5 = arith.addf %2, %4 : vector<128x128xf32>
    %cst_5 = arith.constant 0.000000e+00 : f32
    %6 = vector.broadcast %cst_5 : f32 to vector<128x128xf32>
    %7 = arith.maximumf %5, %6 : vector<128x128xf32>
    %c0_6 = arith.constant 0 : index
    %c0_7 = arith.constant 0 : index
    %8 = vector.load %arg4[%c0_6, %c0_7] : memref<128x128xf32, #tpu.memory_space<vmem>>, vector<128x128xf32>
    tpu.vector_store %arg4[%c0_6, %c0_7], %7 {strides = array<i32>} : memref<128x128xf32, #tpu.memory_space<vmem>>, vector<128x128xf32>,
    return
  }
  func.func @transform_0(%arg0: i32) -> (i32, i32) {
    %c0_i32 = arith.constant 0 : i32
    %c0_i32_0 = arith.constant 0 : i32
    return %arg0, %c0_i32 : i32, i32
  }
  func.func @transform_1(%arg0: i32) -> (i32, i32) {
    %c0_i32 = arith.constant 0 : i32
    %c0_i32_0 = arith.constant 0 : i32
    %c0_i32_1 = arith.constant 0 : i32
    return %c0_i32, %c0_i32_0 : i32, i32
  }
  func.func @transform_2(%arg0: i32) -> (i32, i32) {
    %c0_i32 = arith.constant 0 : i32
    %c0_i32_0 = arith.constant 0 : i32
    %c0_i32_1 = arith.constant 0 : i32
    return %c0_i32, %c0_i32_0 : i32, i32
  }
  func.func @transform_3(%arg0: i32) -> (i32, i32) {
    %c0_i32 = arith.constant 0 : i32
    %c0_i32_0 = arith.constant 0 : i32
    return %arg0, %c0_i32 : i32, i32
  }
}

module attributes {stable_mosaic.version = 11 : i64} {
  func.func @_matmul_bias_relu_kernel(%arg0: i32, %arg1: memref<32x128xf32, #tpu.memory_space<vmem>>, %arg2: memref<128x128xf32, #tpu.memory_space<vmem>>, %arg3: memref<1x128xf32, #tpu.memory_space<vmem>>, %arg4: memref<32x128xf32, #tpu.memory_space<vmem>>) attributes {dimension_semantics = [#tpu.dimension_semantics<parallel>], iteration_bounds = array<i64: 1>, scalar_prefetch = 0 : i64, scratch_operands = 0 : i64, tpu.core_type = #tpu.core_type<tc>, window_params = [{transform_indices = @transform_0, window_bounds = array<i64: 32, 128>}, {pipeline_mode = #tpu.pipeline_mode<synchronous>, transform_indices = @transform_1, window_bounds = array<i64: 128, 128>}, {pipeline_mode = #tpu.pipeline_mode<synchronous>, transform_indices = @transform_2, window_bounds = array<i64: 1, 128>}, {transform_indices = @transform_3, window_bounds = array<i64: 32, 128>}]} {
    %c0 = arith.constant 0 : index
    %c0_0 = arith.constant 0 : index
    %0 = vector.load %arg1[%c0, %c0_0] : memref<32x128xf32, #tpu.memory_space<vmem>>, vector<32x128xf32>
    %c0_1 = arith.constant 0 : index
    %c0_2 = arith.constant 0 : index
    %1 = vector.load %arg2[%c0_1, %c0_2] : memref<128x128xf32, #tpu.memory_space<vmem>>, vector<128x128xf32>
    %cst = arith.constant dense<0.000000e+00> : vector<32x128xf32>
    %2 = tpu.matmul %0, %1, %cst {dimension_numbers = #tpu.dot_dimension_numbers<[1], [0], [0], [1], [0, 0, 1, 1], [], []>} : vector<32x128xf32>, vector<128x128xf32>, vector<32x128xf32> -> vector<32x128xf32>
    %c0_3 = arith.constant 0 : index
    %c0_4 = arith.constant 0 : index
    %3 = vector.load %arg3[%c0_3, %c0_4] : memref<1x128xf32, #tpu.memory_space<vmem>>, vector<1x128xf32>
    %4 = vector.broadcast %3 : vector<1x128xf32> to vector<32x128xf32>
    %5 = arith.addf %2, %4 : vector<32x128xf32>
    %cst_5 = arith.constant 0.000000e+00 : f32
    %6 = vector.broadcast %cst_5 : f32 to vector<32x128xf32>
    %7 = arith.maximumf %5, %6 : vector<32x128xf32>
    %c0_6 = arith.constant 0 : index
    %c0_7 = arith.constant 0 : index
    %8 = vector.load %arg4[%c0_6, %c0_7] : memref<32x128xf32, #tpu.memory_space<vmem>>, vector<32x128xf32>
    tpu.vector_store %arg4[%c0_6, %c0_7], %7 {strides = array<i32>} : memref<32x128xf32, #tpu.memory_space<vmem>>, vector<32x128xf32>,
    return
  }
  func.func @transform_0(%arg0: i32) -> (i32, i32) {
    %c0_i32 = arith.constant 0 : i32
    %c0_i32_0 = arith.constant 0 : i32
    return %arg0, %c0_i32 : i32, i32
  }
  func.func @transform_1(%arg0: i32) -> (i32, i32) {
    %c0_i32 = arith.constant 0 : i32
    %c0_i32_0 = arith.constant 0 : i32
    %c0_i32_1 = arith.constant 0 : i32
    return %c0_i32, %c0_i32_0 : i32, i32
  }
  func.func @transform_2(%arg0: i32) -> (i32, i32) {
    %c0_i32 = arith.constant 0 : i32
    %c0_i32_0 = arith.constant 0 : i32
    %c0_i32_1 = arith.constant 0 : i32
    return %c0_i32, %c0_i32_0 : i32, i32
  }
  func.func @transform_3(%arg0: i32) -> (i32, i32) {
    %c0_i32 = arith.constant 0 : i32
    %c0_i32_0 = arith.constant 0 : i32
    return %arg0, %c0_i32 : i32, i32
  }
}

module attributes {stable_mosaic.version = 11 : i64} {
  func.func @_head_kernel(%arg0: i32, %arg1: memref<2x16x16xf32, #tpu.memory_space<vmem>>, %arg2: memref<2x7xf32, #tpu.memory_space<vmem>>, %arg3: memref<2x1xi32, #tpu.memory_space<vmem>>, %arg4: memref<16x32xf32, #tpu.memory_space<vmem>>, %arg5: memref<1x32xf32, #tpu.memory_space<vmem>>, %arg6: memref<7x32xf32, #tpu.memory_space<vmem>>, %arg7: memref<1x32xf32, #tpu.memory_space<vmem>>, %arg8: memref<32x32xf32, #tpu.memory_space<vmem>>, %arg9: memref<1x32xf32, #tpu.memory_space<vmem>>, %arg10: memref<4x32xf32, #tpu.memory_space<vmem>>, %arg11: memref<1x32xf32, #tpu.memory_space<vmem>>, %arg12: memref<32x32xf32, #tpu.memory_space<vmem>>, %arg13: memref<1x32xf32, #tpu.memory_space<vmem>>, %arg14: memref<32x32xf32, #tpu.memory_space<vmem>>, %arg15: memref<1x32xf32, #tpu.memory_space<vmem>>, %arg16: memref<32x32xf32, #tpu.memory_space<vmem>>, %arg17: memref<1x32xf32, #tpu.memory_space<vmem>>, %arg18: memref<32x32xf32, #tpu.memory_space<vmem>>, %arg19: memref<1x32xf32, #tpu.memory_space<vmem>>, %arg20: memref<1x32xf32, #tpu.memory_space<vmem>>, %arg21: memref<1x32xf32, #tpu.memory_space<vmem>>, %arg22: memref<32x128xf32, #tpu.memory_space<vmem>>, %arg23: memref<1x128xf32, #tpu.memory_space<vmem>>, %arg24: memref<128x32xf32, #tpu.memory_space<vmem>>, %arg25: memref<1x32xf32, #tpu.memory_space<vmem>>, %arg26: memref<1x32xf32, #tpu.memory_space<vmem>>, %arg27: memref<1x32xf32, #tpu.memory_space<vmem>>, %arg28: memref<32x32xf32, #tpu.memory_space<vmem>>, %arg29: memref<1x32xf32, #tpu.memory_space<vmem>>, %arg30: memref<32x7xf32, #tpu.memory_space<vmem>>, %arg31: memref<1x7xf32, #tpu.memory_space<vmem>>, %arg32: memref<2x7xf32, #tpu.memory_space<vmem>>) attributes {dimension_semantics = [#tpu.dimension_semantics<arbitrary>], iteration_bounds = array<i64: 1>, scalar_prefetch = 0 : i64, scratch_operands = 0 : i64, tpu.core_type = #tpu.core_type<tc>, window_params = [{pipeline_mode = #tpu.pipeline_mode<synchronous>, transform_indices = @transform_0, window_bounds = array<i64: 2, 16, 16>}, {pipeline_mode = #tpu.pipeline_mode<synchronous>, transform_indices = @transform_1, window_bounds = array<i64: 2, 7>}, {pipeline_mode = #tpu.pipeline_mode<synchronous>, transform_indices = @transform_2, window_bounds = array<i64: 2, 1>}, {pipeline_mode = #tpu.pipeline_mode<synchronous>, transform_indices = @transform_3, window_bounds = array<i64: 16, 32>}, {pipeline_mode = #tpu.pipeline_mode<synchronous>, transform_indices = @transform_4, window_bounds = array<i64: 1, 32>}, {pipeline_mode = #tpu.pipeline_mode<synchronous>, transform_indices = @transform_5, window_bounds = array<i64: 7, 32>}, {pipeline_mode = #tpu.pipeline_mode<synchronous>, transform_indices = @transform_6, window_bounds = array<i64: 1, 32>}, {pipeline_mode = #tpu.pipeline_mode<synchronous>, transform_indices = @transform_7, window_bounds = array<i64: 32, 32>}, {pipeline_mode = #tpu.pipeline_mode<synchronous>, transform_indices = @transform_8, window_bounds = array<i64: 1, 32>}, {pipeline_mode = #tpu.pipeline_mode<synchronous>, transform_indices = @transform_9, window_bounds = array<i64: 4, 32>}, {pipeline_mode = #tpu.pipeline_mode<synchronous>, transform_indices = @transform_10, window_bounds = array<i64: 1, 32>}, {pipeline_mode = #tpu.pipeline_mode<synchronous>, transform_indices = @transform_11, window_bounds = array<i64: 32, 32>}, {pipeline_mode = #tpu.pipeline_mode<synchronous>, transform_indices = @transform_12, window_bounds = array<i64: 1, 32>}, {pipeline_mode = #tpu.pipeline_mode<synchronous>, transform_indices = @transform_13, window_bounds = array<i64: 32, 32>}, {pipeline_mode = #tpu.pipeline_mode<synchronous>, transform_indices = @transform_14, window_bounds = array<i64: 1, 32>}, {pipeline_mode = #tpu.pipeline_mode<synchronous>, transform_indices = @transform_15, window_bounds = array<i64: 32, 32>}, {pipeline_mode = #tpu.pipeline_mode<synchronous>, transform_indices = @transform_16, window_bounds = array<i64: 1, 32>}, {pipeline_mode = #tpu.pipeline_mode<synchronous>, transform_indices = @transform_17, window_bounds = array<i64: 32, 32>}, {pipeline_mode = #tpu.pipeline_mode<synchronous>, transform_indices = @transform_18, window_bounds = array<i64: 1, 32>}, {pipeline_mode = #tpu.pipeline_mode<synchronous>, transform_indices = @transform_19, window_bounds = array<i64: 1, 32>}, {pipeline_mode = #tpu.pipeline_mode<synchronous>, transform_indices = @transform_20, window_bounds = array<i64: 1, 32>}, {pipeline_mode = #tpu.pipeline_mode<synchronous>, transform_indices = @transform_21, window_bounds = array<i64: 32, 128>}, {pipeline_mode = #tpu.pipeline_mode<synchronous>, transform_indices = @transform_22, window_bounds = array<i64: 1, 128>}, {pipeline_mode = #tpu.pipeline_mode<synchronous>, transform_indices = @transform_23, window_bounds = array<i64: 128, 32>}, {pipeline_mode = #tpu.pipeline_mode<synchronous>, transform_indices = @transform_24, window_bounds = array<i64: 1, 32>}, {pipeline_mode = #tpu.pipeline_mode<synchronous>, transform_indices = @transform_25, window_bounds = array<i64: 1, 32>}, {pipeline_mode = #tpu.pipeline_mode<synchronous>, transform_indices = @transform_26, window_bounds = array<i64: 1, 32>}, {pipeline_mode = #tpu.pipeline_mode<synchronous>, transform_indices = @transform_27, window_bounds = array<i64: 32, 32>}, {pipeline_mode = #tpu.pipeline_mode<synchronous>, transform_indices = @transform_28, window_bounds = array<i64: 1, 32>}, {pipeline_mode = #tpu.pipeline_mode<synchronous>, transform_indices = @transform_29, window_bounds = array<i64: 32, 7>}, {pipeline_mode = #tpu.pipeline_mode<synchronous>, transform_indices = @transform_30, window_bounds = array<i64: 1, 7>}, {pipeline_mode = #tpu.pipeline_mode<synchronous>, transform_indices = @transform_31, window_bounds = array<i64: 2, 7>}]} {
    %c0 = arith.constant 0 : index
    %c0_0 = arith.constant 0 : index
    %c0_1 = arith.constant 0 : index
    %0 = vector.load %arg1[%c0, %c0_0, %c0_1] : memref<2x16x16xf32, #tpu.memory_space<vmem>>, vector<2x16x16xf32>
    %cst = arith.constant dense<0.000000e+00> : vector<2x16xf32>
    %1 = vector.multi_reduction <add>, %0, %cst [1] : vector<2x16x16xf32> to vector<2x16xf32>
    %cst_2 = arith.constant 1.600000e+01 : f32
    %2 = vector.broadcast %cst_2 : f32 to vector<2x16xf32>
    %3 = arith.divf %1, %2 : vector<2x16xf32>
    %c0_3 = arith.constant 0 : index
    %c0_4 = arith.constant 0 : index
    %4 = vector.load %arg4[%c0_3, %c0_4] : memref<16x32xf32, #tpu.memory_space<vmem>>, vector<16x32xf32>
    %cst_5 = arith.constant dense<0.000000e+00> : vector<2x32xf32>
    %5 = tpu.matmul %3, %4, %cst_5 {dimension_numbers = #tpu.dot_dimension_numbers<[1], [0], [0], [1], [0, 0, 1, 1], [], []>} : vector<2x16xf32>, vector<16x32xf32>, vector<2x32xf32> -> vector<2x32xf32>
    %c0_6 = arith.constant 0 : index
    %c0_7 = arith.constant 0 : index
    %6 = vector.load %arg5[%c0_6, %c0_7] : memref<1x32xf32, #tpu.memory_space<vmem>>, vector<1x32xf32>
    %7 = vector.broadcast %6 : vector<1x32xf32> to vector<2x32xf32>
    %8 = arith.addf %5, %7 : vector<2x32xf32>
    %c0_8 = arith.constant 0 : index
    %c0_9 = arith.constant 0 : index
    %9 = vector.load %arg2[%c0_8, %c0_9] : memref<2x7xf32, #tpu.memory_space<vmem>>, vector<2x7xf32>
    %c0_10 = arith.constant 0 : index
    %c0_11 = arith.constant 0 : index
    %10 = vector.load %arg6[%c0_10, %c0_11] : memref<7x32xf32, #tpu.memory_space<vmem>>, vector<7x32xf32>
    %cst_12 = arith.constant dense<0.000000e+00> : vector<2x32xf32>
    %11 = tpu.matmul %9, %10, %cst_12 {dimension_numbers = #tpu.dot_dimension_numbers<[1], [0], [0], [1], [0, 0, 1, 1], [], []>} : vector<2x7xf32>, vector<7x32xf32>, vector<2x32xf32> -> vector<2x32xf32>
    %c0_13 = arith.constant 0 : index
    %c0_14 = arith.constant 0 : index
    %12 = vector.load %arg7[%c0_13, %c0_14] : memref<1x32xf32, #tpu.memory_space<vmem>>, vector<1x32xf32>
    %13 = vector.broadcast %12 : vector<1x32xf32> to vector<2x32xf32>
    %14 = arith.addf %11, %13 : vector<2x32xf32>
    %cst_15 = arith.constant 0.000000e+00 : f32
    %15 = vector.broadcast %cst_15 : f32 to vector<2x32xf32>
    %16 = arith.maximumf %14, %15 : vector<2x32xf32>
    %c0_16 = arith.constant 0 : index
    %c0_17 = arith.constant 0 : index
    %17 = vector.load %arg8[%c0_16, %c0_17] : memref<32x32xf32, #tpu.memory_space<vmem>>, vector<32x32xf32>
    %cst_18 = arith.constant dense<0.000000e+00> : vector<2x32xf32>
    %18 = tpu.matmul %16, %17, %cst_18 {dimension_numbers = #tpu.dot_dimension_numbers<[1], [0], [0], [1], [0, 0, 1, 1], [], []>} : vector<2x32xf32>, vector<32x32xf32>, vector<2x32xf32> -> vector<2x32xf32>
    %c0_19 = arith.constant 0 : index
    %c0_20 = arith.constant 0 : index
    %19 = vector.load %arg9[%c0_19, %c0_20] : memref<1x32xf32, #tpu.memory_space<vmem>>, vector<1x32xf32>
    %20 = vector.broadcast %19 : vector<1x32xf32> to vector<2x32xf32>
    %21 = arith.addf %18, %20 : vector<2x32xf32>
    %c0_21 = arith.constant 0 : index
    %c0_22 = arith.constant 0 : index
    %22 = vector.load %arg3[%c0_21, %c0_22] : memref<2x1xi32, #tpu.memory_space<vmem>>, vector<2x1xi32>
    %23 = tpu.iota {dimensions = array<i32: 1>} : vector<2x4xi32>
    %24 = vector.broadcast %22 : vector<2x1xi32> to vector<2x4xi32>
    %25 = arith.cmpi eq, %23, %24 : vector<2x4xi32>
    %26 = arith.extui %25 : vector<2x4xi1> to vector<2x4xi32>
    %27 = arith.sitofp %26 : vector<2x4xi32> to vector<2x4xf32>
    %c0_23 = arith.constant 0 : index
    %c0_24 = arith.constant 0 : index
    %28 = vector.load %arg10[%c0_23, %c0_24] : memref<4x32xf32, #tpu.memory_space<vmem>>, vector<4x32xf32>
    %cst_25 = arith.constant dense<0.000000e+00> : vector<2x32xf32>
    %29 = tpu.matmul %27, %28, %cst_25 {dimension_numbers = #tpu.dot_dimension_numbers<[1], [0], [0], [1], [0, 0, 1, 1], [], []>} : vector<2x4xf32>, vector<4x32xf32>, vector<2x32xf32> -> vector<2x32xf32>
    %c0_26 = arith.constant 0 : index
    %c0_27 = arith.constant 0 : index
    %30 = vector.load %arg11[%c0_26, %c0_27] : memref<1x32xf32, #tpu.memory_space<vmem>>, vector<1x32xf32>
    %31 = vector.broadcast %30 : vector<1x32xf32> to vector<2x32xf32>
    %32 = arith.addf %29, %31 : vector<2x32xf32>
    %33 = tpu.concatenate %8, %21, %32 in 0 : vector<2x32xf32>, vector<2x32xf32>, vector<2x32xf32> -> vector<6x32xf32>
    %c0_28 = arith.constant 0 : index
    %c0_29 = arith.constant 0 : index
    %34 = vector.load %arg12[%c0_28, %c0_29] : memref<32x32xf32, #tpu.memory_space<vmem>>, vector<32x32xf32>
    %cst_30 = arith.constant dense<0.000000e+00> : vector<6x32xf32>
    %35 = tpu.matmul %33, %34, %cst_30 {dimension_numbers = #tpu.dot_dimension_numbers<[1], [0], [0], [1], [0, 0, 1, 1], [], []>} : vector<6x32xf32>, vector<32x32xf32>, vector<6x32xf32> -> vector<6x32xf32>
    %c0_31 = arith.constant 0 : index
    %c0_32 = arith.constant 0 : index
    %36 = vector.load %arg13[%c0_31, %c0_32] : memref<1x32xf32, #tpu.memory_space<vmem>>, vector<1x32xf32>
    %37 = vector.broadcast %36 : vector<1x32xf32> to vector<6x32xf32>
    %38 = arith.addf %35, %37 : vector<6x32xf32>
    %39 = vector.shape_cast %38 : vector<6x32xf32> to vector<3x2x32xf32>
    %c0_33 = arith.constant 0 : index
    %c0_34 = arith.constant 0 : index
    %40 = vector.load %arg14[%c0_33, %c0_34] : memref<32x32xf32, #tpu.memory_space<vmem>>, vector<32x32xf32>
    %cst_35 = arith.constant dense<0.000000e+00> : vector<6x32xf32>
    %41 = tpu.matmul %33, %40, %cst_35 {dimension_numbers = #tpu.dot_dimension_numbers<[1], [0], [0], [1], [0, 0, 1, 1], [], []>} : vector<6x32xf32>, vector<32x32xf32>, vector<6x32xf32> -> vector<6x32xf32>
    %c0_36 = arith.constant 0 : index
    %c0_37 = arith.constant 0 : index
    %42 = vector.load %arg15[%c0_36, %c0_37] : memref<1x32xf32, #tpu.memory_space<vmem>>, vector<1x32xf32>
    %43 = vector.broadcast %42 : vector<1x32xf32> to vector<6x32xf32>
    %44 = arith.addf %41, %43 : vector<6x32xf32>
    %45 = vector.shape_cast %44 : vector<6x32xf32> to vector<3x2x32xf32>
    %c0_38 = arith.constant 0 : index
    %c0_39 = arith.constant 0 : index
    %46 = vector.load %arg16[%c0_38, %c0_39] : memref<32x32xf32, #tpu.memory_space<vmem>>, vector<32x32xf32>
    %cst_40 = arith.constant dense<0.000000e+00> : vector<6x32xf32>
    %47 = tpu.matmul %33, %46, %cst_40 {dimension_numbers = #tpu.dot_dimension_numbers<[1], [0], [0], [1], [0, 0, 1, 1], [], []>} : vector<6x32xf32>, vector<32x32xf32>, vector<6x32xf32> -> vector<6x32xf32>
    %c0_41 = arith.constant 0 : index
    %c0_42 = arith.constant 0 : index
    %48 = vector.load %arg17[%c0_41, %c0_42] : memref<1x32xf32, #tpu.memory_space<vmem>>, vector<1x32xf32>
    %49 = vector.broadcast %48 : vector<1x32xf32> to vector<6x32xf32>
    %50 = arith.addf %47, %49 : vector<6x32xf32>
    %51 = vector.shape_cast %50 : vector<6x32xf32> to vector<3x2x32xf32>
    "tpu.trace_start"() <{level = 10 : i32, message = "sbe,tbe->bst"}> : () -> ()
    %cst_43 = arith.constant dense<0.000000e+00> : vector<2x3x3xf32>
    %52 = tpu.matmul %39, %45, %cst_43 {dimension_numbers = #tpu.dot_dimension_numbers<[2], [2], [0], [0], [0, 1, 0, 0, 1, 0], [1], [1]>} : vector<3x2x32xf32>, vector<3x2x32xf32>, vector<2x3x3xf32> -> vector<2x3x3xf32>
    "tpu.trace_stop"() : () -> ()
    %cst_44 = arith.constant 0.176776692 : f32
    %53 = vector.broadcast %cst_44 : f32 to vector<2x3x3xf32>
    %54 = arith.mulf %52, %53 : vector<2x3x3xf32>
    %cst_45 = arith.constant dense<0xFF800000> : vector<2x3xf32>
    %55 = vector.multi_reduction <maximumf>, %54, %cst_45 [2] : vector<2x3x3xf32> to vector<2x3xf32>
    %56 = vector.shape_cast %55 : vector<2x3xf32> to vector<2x3x1xf32>
    %57 = vector.broadcast %56 : vector<2x3x1xf32> to vector<2x3x3xf32>
    %58 = arith.subf %54, %57 : vector<2x3x3xf32>
    %59 = math.exp %58 : vector<2x3x3xf32>
    %cst_46 = arith.constant dense<0.000000e+00> : vector<2x3xf32>
    %60 = vector.multi_reduction <add>, %59, %cst_46 [2] : vector<2x3x3xf32> to vector<2x3xf32>
    %61 = vector.shape_cast %60 : vector<2x3xf32> to vector<2x3x1xf32>
    %62 = tpu.reciprocal %61 {approx = true} : vector<2x3x1xf32> -> vector<2x3x1xf32>
    %63 = vector.broadcast %62 : vector<2x3x1xf32> to vector<2x3x3xf32>
    %64 = arith.mulf %59, %63 : vector<2x3x3xf32>
    "tpu.trace_start"() <{level = 10 : i32, message = "bst,tbe->sbe"}> : () -> ()
    %cst_47 = arith.constant dense<0.000000e+00> : vector<2x32x3xf32>
    %65 = tpu.matmul %51, %64, %cst_47 {dimension_numbers = #tpu.dot_dimension_numbers<[0], [2], [2], [1], [0, 1, 0, 2, 1, 1], [1], [0]>} : vector<3x2x32xf32>, vector<2x3x3xf32>, vector<2x32x3xf32> -> vector<2x32x3xf32>
    %66 = tpu.transpose %65, [2, 0, 1] : vector<2x32x3xf32> -> vector<3x2x32xf32>
    "tpu.trace_stop"() : () -> ()
    %67 = vector.shape_cast %66 : vector<3x2x32xf32> to vector<6x32xf32>
    %c0_48 = arith.constant 0 : index
    %c0_49 = arith.constant 0 : index
    %68 = vector.load %arg18[%c0_48, %c0_49] : memref<32x32xf32, #tpu.memory_space<vmem>>, vector<32x32xf32>
    %cst_50 = arith.constant dense<0.000000e+00> : vector<6x32xf32>
    %69 = tpu.matmul %67, %68, %cst_50 {dimension_numbers = #tpu.dot_dimension_numbers<[1], [0], [0], [1], [0, 0, 1, 1], [], []>} : vector<6x32xf32>, vector<32x32xf32>, vector<6x32xf32> -> vector<6x32xf32>
    %c0_51 = arith.constant 0 : index
    %c0_52 = arith.constant 0 : index
    %70 = vector.load %arg19[%c0_51, %c0_52] : memref<1x32xf32, #tpu.memory_space<vmem>>, vector<1x32xf32>
    %71 = vector.broadcast %70 : vector<1x32xf32> to vector<6x32xf32>
    %72 = arith.addf %69, %71 : vector<6x32xf32>
    %73 = arith.addf %33, %72 : vector<6x32xf32>
    %cst_53 = arith.constant dense<0.000000e+00> : vector<6xf32>
    %74 = vector.multi_reduction <add>, %73, %cst_53 [1] : vector<6x32xf32> to vector<6xf32>
    %75 = vector.shape_cast %74 : vector<6xf32> to vector<6x1xf32>
    %cst_54 = arith.constant 3.200000e+01 : f32
    %76 = vector.broadcast %cst_54 : f32 to vector<6x1xf32>
    %77 = arith.divf %75, %76 : vector<6x1xf32>
    %78 = vector.broadcast %77 : vector<6x1xf32> to vector<6x32xf32>
    %79 = arith.subf %73, %78 : vector<6x32xf32>
    %80 = arith.mulf %79, %79 : vector<6x32xf32>
    %cst_55 = arith.constant dense<0.000000e+00> : vector<6xf32>
    %81 = vector.multi_reduction <add>, %80, %cst_55 [1] : vector<6x32xf32> to vector<6xf32>
    %82 = vector.shape_cast %81 : vector<6xf32> to vector<6x1xf32>
    %cst_56 = arith.constant 3.200000e+01 : f32
    %83 = vector.broadcast %cst_56 : f32 to vector<6x1xf32>
    %84 = arith.divf %82, %83 : vector<6x1xf32>
    %85 = vector.broadcast %77 : vector<6x1xf32> to vector<6x32xf32>
    %86 = arith.subf %73, %85 : vector<6x32xf32>
    %cst_57 = arith.constant 9.99999974E-6 : f32
    %87 = vector.broadcast %cst_57 : f32 to vector<6x1xf32>
    %88 = arith.addf %84, %87 : vector<6x1xf32>
    %89 = math.rsqrt %88 : vector<6x1xf32>
    %90 = vector.broadcast %89 : vector<6x1xf32> to vector<6x32xf32>
    %91 = arith.mulf %86, %90 : vector<6x32xf32>
    %c0_58 = arith.constant 0 : index
    %c0_59 = arith.constant 0 : index
    %92 = vector.load %arg20[%c0_58, %c0_59] : memref<1x32xf32, #tpu.memory_space<vmem>>, vector<1x32xf32>
    %93 = vector.broadcast %92 : vector<1x32xf32> to vector<6x32xf32>
    %94 = arith.mulf %91, %93 : vector<6x32xf32>
    %c0_60 = arith.constant 0 : index
    %c0_61 = arith.constant 0 : index
    %95 = vector.load %arg21[%c0_60, %c0_61] : memref<1x32xf32, #tpu.memory_space<vmem>>, vector<1x32xf32>
    %96 = vector.broadcast %95 : vector<1x32xf32> to vector<6x32xf32>
    %97 = arith.addf %94, %96 : vector<6x32xf32>
    %c0_62 = arith.constant 0 : index
    %c0_63 = arith.constant 0 : index
    %98 = vector.load %arg22[%c0_62, %c0_63] : memref<32x128xf32, #tpu.memory_space<vmem>>, vector<32x128xf32>
    %cst_64 = arith.constant dense<0.000000e+00> : vector<6x128xf32>
    %99 = tpu.matmul %97, %98, %cst_64 {dimension_numbers = #tpu.dot_dimension_numbers<[1], [0], [0], [1], [0, 0, 1, 1], [], []>} : vector<6x32xf32>, vector<32x128xf32>, vector<6x128xf32> -> vector<6x128xf32>
    %c0_65 = arith.constant 0 : index
    %c0_66 = arith.constant 0 : index
    %100 = vector.load %arg23[%c0_65, %c0_66] : memref<1x128xf32, #tpu.memory_space<vmem>>, vector<1x128xf32>
    %101 = vector.broadcast %100 : vector<1x128xf32> to vector<6x128xf32>
    %102 = arith.addf %99, %101 : vector<6x128xf32>
    %cst_67 = arith.constant 0.000000e+00 : f32
    %103 = vector.broadcast %cst_67 : f32 to vector<6x128xf32>
    %104 = arith.maximumf %102, %103 : vector<6x128xf32>
    %c0_68 = arith.constant 0 : index
    %c0_69 = arith.constant 0 : index
    %105 = vector.load %arg24[%c0_68, %c0_69] : memref<128x32xf32, #tpu.memory_space<vmem>>, vector<128x32xf32>
    %cst_70 = arith.constant dense<0.000000e+00> : vector<6x32xf32>
    %106 = tpu.matmul %104, %105, %cst_70 {dimension_numbers = #tpu.dot_dimension_numbers<[1], [0], [0], [1], [0, 0, 1, 1], [], []>} : vector<6x128xf32>, vector<128x32xf32>, vector<6x32xf32> -> vector<6x32xf32>
    %c0_71 = arith.constant 0 : index
    %c0_72 = arith.constant 0 : index
    %107 = vector.load %arg25[%c0_71, %c0_72] : memref<1x32xf32, #tpu.memory_space<vmem>>, vector<1x32xf32>
    %108 = vector.broadcast %107 : vector<1x32xf32> to vector<6x32xf32>
    %109 = arith.addf %106, %108 : vector<6x32xf32>
    %110 = arith.addf %97, %109 : vector<6x32xf32>
    %cst_73 = arith.constant dense<0.000000e+00> : vector<6xf32>
    %111 = vector.multi_reduction <add>, %110, %cst_73 [1] : vector<6x32xf32> to vector<6xf32>
    %112 = vector.shape_cast %111 : vector<6xf32> to vector<6x1xf32>
    %cst_74 = arith.constant 3.200000e+01 : f32
    %113 = vector.broadcast %cst_74 : f32 to vector<6x1xf32>
    %114 = arith.divf %112, %113 : vector<6x1xf32>
    %115 = vector.broadcast %114 : vector<6x1xf32> to vector<6x32xf32>
    %116 = arith.subf %110, %115 : vector<6x32xf32>
    %117 = arith.mulf %116, %116 : vector<6x32xf32>
    %cst_75 = arith.constant dense<0.000000e+00> : vector<6xf32>
    %118 = vector.multi_reduction <add>, %117, %cst_75 [1] : vector<6x32xf32> to vector<6xf32>
    %119 = vector.shape_cast %118 : vector<6xf32> to vector<6x1xf32>
    %cst_76 = arith.constant 3.200000e+01 : f32
    %120 = vector.broadcast %cst_76 : f32 to vector<6x1xf32>
    %121 = arith.divf %119, %120 : vector<6x1xf32>
    %122 = vector.broadcast %114 : vector<6x1xf32> to vector<6x32xf32>
    %123 = arith.subf %110, %122 : vector<6x32xf32>
    %cst_77 = arith.constant 9.99999974E-6 : f32
    %124 = vector.broadcast %cst_77 : f32 to vector<6x1xf32>
    %125 = arith.addf %121, %124 : vector<6x1xf32>
    %126 = math.rsqrt %125 : vector<6x1xf32>
    %127 = vector.broadcast %126 : vector<6x1xf32> to vector<6x32xf32>
    %128 = arith.mulf %123, %127 : vector<6x32xf32>
    %c0_78 = arith.constant 0 : index
    %c0_79 = arith.constant 0 : index
    %129 = vector.load %arg26[%c0_78, %c0_79] : memref<1x32xf32, #tpu.memory_space<vmem>>, vector<1x32xf32>
    %130 = vector.broadcast %129 : vector<1x32xf32> to vector<6x32xf32>
    %131 = arith.mulf %128, %130 : vector<6x32xf32>
    %c0_80 = arith.constant 0 : index
    %c0_81 = arith.constant 0 : index
    %132 = vector.load %arg27[%c0_80, %c0_81] : memref<1x32xf32, #tpu.memory_space<vmem>>, vector<1x32xf32>
    %133 = vector.broadcast %132 : vector<1x32xf32> to vector<6x32xf32>
    %134 = arith.addf %131, %133 : vector<6x32xf32>
    %135 = vector.shape_cast %134 : vector<6x32xf32> to vector<3x2x32xf32>
    %cst_82 = arith.constant dense<0.000000e+00> : vector<2x32xf32>
    %136 = vector.multi_reduction <add>, %135, %cst_82 [0] : vector<3x2x32xf32> to vector<2x32xf32>
    %cst_83 = arith.constant 3.000000e+00 : f32
    %137 = vector.broadcast %cst_83 : f32 to vector<2x32xf32>
    %138 = arith.divf %136, %137 : vector<2x32xf32>
    %c0_84 = arith.constant 0 : index
    %c0_85 = arith.constant 0 : index
    %139 = vector.load %arg28[%c0_84, %c0_85] : memref<32x32xf32, #tpu.memory_space<vmem>>, vector<32x32xf32>
    %cst_86 = arith.constant dense<0.000000e+00> : vector<2x32xf32>
    %140 = tpu.matmul %138, %139, %cst_86 {dimension_numbers = #tpu.dot_dimension_numbers<[1], [0], [0], [1], [0, 0, 1, 1], [], []>} : vector<2x32xf32>, vector<32x32xf32>, vector<2x32xf32> -> vector<2x32xf32>
    %c0_87 = arith.constant 0 : index
    %c0_88 = arith.constant 0 : index
    %141 = vector.load %arg29[%c0_87, %c0_88] : memref<1x32xf32, #tpu.memory_space<vmem>>, vector<1x32xf32>
    %142 = vector.broadcast %141 : vector<1x32xf32> to vector<2x32xf32>
    %143 = arith.addf %140, %142 : vector<2x32xf32>
    %cst_89 = arith.constant 0.000000e+00 : f32
    %144 = vector.broadcast %cst_89 : f32 to vector<2x32xf32>
    %145 = arith.maximumf %143, %144 : vector<2x32xf32>
    %c0_90 = arith.constant 0 : index
    %c0_91 = arith.constant 0 : index
    %146 = vector.load %arg30[%c0_90, %c0_91] : memref<32x7xf32, #tpu.memory_space<vmem>>, vector<32x7xf32>
    %cst_92 = arith.constant dense<0.000000e+00> : vector<2x7xf32>
    %147 = tpu.matmul %145, %146, %cst_92 {dimension_numbers = #tpu.dot_dimension_numbers<[1], [0], [0], [1], [0, 0, 1, 1], [], []>} : vector<2x32xf32>, vector<32x7xf32>, vector<2x7xf32> -> vector<2x7xf32>
    %c0_93 = arith.constant 0 : index
    %c0_94 = arith.constant 0 : index
    %148 = vector.load %arg31[%c0_93, %c0_94] : memref<1x7xf32, #tpu.memory_space<vmem>>, vector<1x7xf32>
    %149 = vector.broadcast %148 : vector<1x7xf32> to vector<2x7xf32>
    %150 = arith.addf %147, %149 : vector<2x7xf32>
    %151 = math.tanh %150 : vector<2x7xf32>
    %c0_95 = arith.constant 0 : index
    %c0_96 = arith.constant 0 : index
    %152 = vector.load %arg32[%c0_95, %c0_96] : memref<2x7xf32, #tpu.memory_space<vmem>>, vector<2x7xf32>
    tpu.vector_store %arg32[%c0_95, %c0_96], %151 {strides = array<i32>} : memref<2x7xf32, #tpu.memory_space<vmem>>, vector<2x7xf32>,
    return
  }
  func.func @transform_0(%arg0: i32) -> (i32, i32, i32) {
    %c0_i32 = arith.constant 0 : i32
    %c0_i32_0 = arith.constant 0 : i32
    %c0_i32_1 = arith.constant 0 : i32
    %c0_i32_2 = arith.constant 0 : i32
    return %c0_i32, %c0_i32_0, %c0_i32_1 : i32, i32, i32
  }
  func.func @transform_1(%arg0: i32) -> (i32, i32) {
    %c0_i32 = arith.constant 0 : i32
    %c0_i32_0 = arith.constant 0 : i32
    %c0_i32_1 = arith.constant 0 : i32
    return %c0_i32, %c0_i32_0 : i32, i32
  }
  func.func @transform_2(%arg0: i32) -> (i32, i32) {
    %c0_i32 = arith.constant 0 : i32
    %c0_i32_0 = arith.constant 0 : i32
    %c0_i32_1 = arith.constant 0 : i32
    return %c0_i32, %c0_i32_0 : i32, i32
  }
  func.func @transform_3(%arg0: i32) -> (i32, i32) {
    %c0_i32 = arith.constant 0 : i32
    %c0_i32_0 = arith.constant 0 : i32
    %c0_i32_1 = arith.constant 0 : i32
    return %c0_i32, %c0_i32_0 : i32, i32
  }
  func.func @transform_4(%arg0: i32) -> (i32, i32) {
    %c0_i32 = arith.constant 0 : i32
    %c0_i32_0 = arith.constant 0 : i32
    %c0_i32_1 = arith.constant 0 : i32
    return %c0_i32, %c0_i32_0 : i32, i32
  }
  func.func @transform_5(%arg0: i32) -> (i32, i32) {
    %c0_i32 = arith.constant 0 : i32
    %c0_i32_0 = arith.constant 0 : i32
    %c0_i32_1 = arith.constant 0 : i32
    return %c0_i32, %c0_i32_0 : i32, i32
  }
  func.func @transform_6(%arg0: i32) -> (i32, i32) {
    %c0_i32 = arith.constant 0 : i32
    %c0_i32_0 = arith.constant 0 : i32
    %c0_i32_1 = arith.constant 0 : i32
    return %c0_i32, %c0_i32_0 : i32, i32
  }
  func.func @transform_7(%arg0: i32) -> (i32, i32) {
    %c0_i32 = arith.constant 0 : i32
    %c0_i32_0 = arith.constant 0 : i32
    %c0_i32_1 = arith.constant 0 : i32
    return %c0_i32, %c0_i32_0 : i32, i32
  }
  func.func @transform_8(%arg0: i32) -> (i32, i32) {
    %c0_i32 = arith.constant 0 : i32
    %c0_i32_0 = arith.constant 0 : i32
    %c0_i32_1 = arith.constant 0 : i32
    return %c0_i32, %c0_i32_0 : i32, i32
  }
  func.func @transform_9(%arg0: i32) -> (i32, i32) {
    %c0_i32 = arith.constant 0 : i32
    %c0_i32_0 = arith.constant 0 : i32
    %c0_i32_1 = arith.constant 0 : i32
    return %c0_i32, %c0_i32_0 : i32, i32
  }
  func.func @transform_10(%arg0: i32) -> (i32, i32) {
    %c0_i32 = arith.constant 0 : i32
    %c0_i32_0 = arith.constant 0 : i32
    %c0_i32_1 = arith.constant 0 : i32
    return %c0_i32, %c0_i32_0 : i32, i32
  }
  func.func @transform_11(%arg0: i32) -> (i32, i32) {
    %c0_i32 = arith.constant 0 : i32
    %c0_i32_0 = arith.constant 0 : i32
    %c0_i32_1 = arith.constant 0 : i32
    return %c0_i32, %c0_i32_0 : i32, i32
  }
  func.func @transform_12(%arg0: i32) -> (i32, i32) {
    %c0_i32 = arith.constant 0 : i32
    %c0_i32_0 = arith.constant 0 : i32
    %c0_i32_1 = arith.constant 0 : i32
    return %c0_i32, %c0_i32_0 : i32, i32
  }
  func.func @transform_13(%arg0: i32) -> (i32, i32) {
    %c0_i32 = arith.constant 0 : i32
    %c0_i32_0 = arith.constant 0 : i32
    %c0_i32_1 = arith.constant 0 : i32
    return %c0_i32, %c0_i32_0 : i32, i32
  }
  func.func @transform_14(%arg0: i32) -> (i32, i32) {
    %c0_i32 = arith.constant 0 : i32
    %c0_i32_0 = arith.constant 0 : i32
    %c0_i32_1 = arith.constant 0 : i32
    return %c0_i32, %c0_i32_0 : i32, i32
  }
  func.func @transform_15(%arg0: i32) -> (i32, i32) {
    %c0_i32 = arith.constant 0 : i32
    %c0_i32_0 = arith.constant 0 : i32
    %c0_i32_1 = arith.constant 0 : i32
    return %c0_i32, %c0_i32_0 : i32, i32
  }
  func.func @transform_16(%arg0: i32) -> (i32, i32) {
    %c0_i32 = arith.constant 0 : i32
    %c0_i32_0 = arith.constant 0 : i32
    %c0_i32_1 = arith.constant 0 : i32
    return %c0_i32, %c0_i32_0 : i32, i32
  }
  func.func @transform_17(%arg0: i32) -> (i32, i32) {
    %c0_i32 = arith.constant 0 : i32
    %c0_i32_0 = arith.constant 0 : i32
    %c0_i32_1 = arith.constant 0 : i32
    return %c0_i32, %c0_i32_0 : i32, i32
  }
  func.func @transform_18(%arg0: i32) -> (i32, i32) {
    %c0_i32 = arith.constant 0 : i32
    %c0_i32_0 = arith.constant 0 : i32
    %c0_i32_1 = arith.constant 0 : i32
    return %c0_i32, %c0_i32_0 : i32, i32
  }
  func.func @transform_19(%arg0: i32) -> (i32, i32) {
    %c0_i32 = arith.constant 0 : i32
    %c0_i32_0 = arith.constant 0 : i32
    %c0_i32_1 = arith.constant 0 : i32
    return %c0_i32, %c0_i32_0 : i32, i32
  }
  func.func @transform_20(%arg0: i32) -> (i32, i32) {
    %c0_i32 = arith.constant 0 : i32
    %c0_i32_0 = arith.constant 0 : i32
    %c0_i32_1 = arith.constant 0 : i32
    return %c0_i32, %c0_i32_0 : i32, i32
  }
  func.func @transform_21(%arg0: i32) -> (i32, i32) {
    %c0_i32 = arith.constant 0 : i32
    %c0_i32_0 = arith.constant 0 : i32
    %c0_i32_1 = arith.constant 0 : i32
    return %c0_i32, %c0_i32_0 : i32, i32
  }
  func.func @transform_22(%arg0: i32) -> (i32, i32) {
    %c0_i32 = arith.constant 0 : i32
    %c0_i32_0 = arith.constant 0 : i32
    %c0_i32_1 = arith.constant 0 : i32
    return %c0_i32, %c0_i32_0 : i32, i32
  }
  func.func @transform_23(%arg0: i32) -> (i32, i32) {
    %c0_i32 = arith.constant 0 : i32
    %c0_i32_0 = arith.constant 0 : i32
    %c0_i32_1 = arith.constant 0 : i32
    return %c0_i32, %c0_i32_0 : i32, i32
  }
  func.func @transform_24(%arg0: i32) -> (i32, i32) {
    %c0_i32 = arith.constant 0 : i32
    %c0_i32_0 = arith.constant 0 : i32
    %c0_i32_1 = arith.constant 0 : i32
    return %c0_i32, %c0_i32_0 : i32, i32
  }
  func.func @transform_25(%arg0: i32) -> (i32, i32) {
    %c0_i32 = arith.constant 0 : i32
    %c0_i32_0 = arith.constant 0 : i32
    %c0_i32_1 = arith.constant 0 : i32
    return %c0_i32, %c0_i32_0 : i32, i32
  }
  func.func @transform_26(%arg0: i32) -> (i32, i32) {
    %c0_i32 = arith.constant 0 : i32
    %c0_i32_0 = arith.constant 0 : i32
    %c0_i32_1 = arith.constant 0 : i32
    return %c0_i32, %c0_i32_0 : i32, i32
  }
  func.func @transform_27(%arg0: i32) -> (i32, i32) {
    %c0_i32 = arith.constant 0 : i32
    %c0_i32_0 = arith.constant 0 : i32
    %c0_i32_1 = arith.constant 0 : i32
    return %c0_i32, %c0_i32_0 : i32, i32
  }
  func.func @transform_28(%arg0: i32) -> (i32, i32) {
    %c0_i32 = arith.constant 0 : i32
    %c0_i32_0 = arith.constant 0 : i32
    %c0_i32_1 = arith.constant 0 : i32
    return %c0_i32, %c0_i32_0 : i32, i32
  }
  func.func @transform_29(%arg0: i32) -> (i32, i32) {
    %c0_i32 = arith.constant 0 : i32
    %c0_i32_0 = arith.constant 0 : i32
    %c0_i32_1 = arith.constant 0 : i32
    return %c0_i32, %c0_i32_0 : i32, i32
  }
  func.func @transform_30(%arg0: i32) -> (i32, i32) {
    %c0_i32 = arith.constant 0 : i32
    %c0_i32_0 = arith.constant 0 : i32
    %c0_i32_1 = arith.constant 0 : i32
    return %c0_i32, %c0_i32_0 : i32, i32
  }
  func.func @transform_31(%arg0: i32) -> (i32, i32) {
    %c0_i32 = arith.constant 0 : i32
    %c0_i32_0 = arith.constant 0 : i32
    %c0_i32_1 = arith.constant 0 : i32
    return %c0_i32, %c0_i32_0 : i32, i32
  }
}

</mosaic_0001>

<bundles_post_ra>
// kernel: backbone_forward.3
= control target key start
LH: loop header
LB: loop body
LE: loop exit
PB: predicated region body
PF: predicated region fallthrough
CT: control target
= control target key end

     0   :  { %s522_s1 = inlined_call_operand.vmem [shape: f32[128,128], index: 1, kind: input, shape index: {}]   ;;  %s523_s0 = inlined_call_operand.vmem [shape: f32[128,128], index: 0, kind: input, shape index: {}]   ;;  %s524_s2 = inlined_call_operand.vmem [shape: f32[1,128], index: 2, kind: input, shape index: {}]   ;;  %s525_s3 = inlined_call_operand.vmem [shape: f32[128,128], index: 3, kind: output, shape index: {}]  }
   0x1   :  { %v45_v0 = vld [vmem:[%s522_s1 + $0x78] sm:$0xff]  ;;  %v44_v1 = vld [vmem:[%s522_s1 + $0x70] sm:$0xff]  ;;  %v43_v2 = vld [vmem:[%s522_s1 + $0x68] sm:$0xff] }
   0x2   :  { %267 = vmatprep.subr.mxu0 %v45_v0  ;;  %323 = vmatprep.subr.mxu1 %v45_v0  ;;  %v42_v3 = vld [vmem:[%s522_s1 + $0x60] sm:$0xff]  ;;  %v41_v4 = vld [vmem:[%s522_s1 + $0x58] sm:$0xff]  ;;  %v40_v5 = vld [vmem:[%s522_s1 + $0x50] sm:$0xff] }
   0x3   :  { %268 = vmatpush3.msra.mxu0 %v45_v0  ;;  %339 = vmatpush3.msra.mxu1 %v45_v0  ;;  %v39_v6 = vld [vmem:[%s522_s1 + $0x48] sm:$0xff]  ;;  %v38_v7 = vld [vmem:[%s522_s1 + $0x40] sm:$0xff]  ;;  %v37_v8 = vld [vmem:[%s522_s1 + $0x38] sm:$0xff] }
   0x4   :  { %269 = vmatprep.subr.mxu0 %v44_v1  ;;  %324 = vmatprep.subr.mxu1 %v44_v1  ;;  %v36_v9 = vld [vmem:[%s522_s1 + $0x30] sm:$0xff]  ;;  %v35_v10 = vld [vmem:[%s522_s1 + $0x28] sm:$0xff]  ;;  %v34_v11 = vld [vmem:[%s522_s1 + $0x20] sm:$0xff] }
   0x5   :  { %270 = vmatpush3.msra.mxu0 %v44_v1  ;;  %340 = vmatpush3.msra.mxu1 %v44_v1  ;;  %v33_v12 = vld [vmem:[%s522_s1 + $0x18] sm:$0xff]  ;;  %v32_v13 = vld [vmem:[%s522_s1 + $0x10] sm:$0xff]  ;;  %v31_v14 = vld [vmem:[%s522_s1 + $0x8] sm:$0xff] }
   0x6   :  { %271 = vmatprep.subr.mxu0 %v43_v2  ;;  %325 = vmatprep.subr.mxu1 %v43_v2  ;;  %v30_v15 = vld [vmem:[%s522_s1] sm:$0xff]  ;;  %v15_v18 = vld [vmem:[%s523_s0 + $0x8] sm:$0xff]  ;;  %v16_v20 = vld [vmem:[%s523_s0 + $0x10] sm:$0xff] }
   0x7   :  { %272 = vmatpush3.msra.mxu0 %v43_v2  ;;  %341 = vmatpush3.msra.mxu1 %v43_v2  ;;  %v14_v16 = vld [vmem:[%s523_s0] sm:$0xff]  ;;  %v23_v19 = vld [vmem:[%s523_s0 + $0x48] sm:$0xff]  ;;  %v24_v21 = vld [vmem:[%s523_s0 + $0x50] sm:$0xff] }
   0x8   :  { %273 = vmatprep.subr.mxu0 %v42_v3  ;;  %326 = vmatprep.subr.mxu1 %v42_v3  ;;  %v22_v17 = vld [vmem:[%s523_s0 + $0x40] sm:$0xff]  ;;  %v17_v22 = vld [vmem:[%s523_s0 + $0x18] sm:$0xff]  ;;  %v19_v26 = vld [vmem:[%s523_s0 + $0x28] sm:$0xff] }
   0x9   :  { %274 = vmatpush3.msra.mxu0 %v42_v3  ;;  %342 = vmatpush3.msra.mxu1 %v42_v3  ;;  %v25_v23 = vld [vmem:[%s523_s0 + $0x58] sm:$0xff]  ;;  %v18_v24 = vld [vmem:[%s523_s0 + $0x20] sm:$0xff]  ;;  %v27_v27 = vld [vmem:[%s523_s0 + $0x68] sm:$0xff] }
   0xa   :  { %275 = vmatprep.subr.mxu0 %v41_v4  ;;  %327 = vmatprep.subr.mxu1 %v41_v4  ;;  %v26_v25 = vld [vmem:[%s523_s0 + $0x60] sm:$0xff]  ;;  %v20_v28 = vld [vmem:[%s523_s0 + $0x30] sm:$0xff]  ;;  %v21_v30 = vld [vmem:[%s523_s0 + $0x38] sm:$0xff] }
   0xb   :  { %276 = vmatpush3.msra.mxu0 %v41_v4  ;;  %343 = vmatpush3.msra.mxu1 %v41_v4  ;;  %v28_v29 = vld [vmem:[%s523_s0 + $0x70] sm:$0xff]  ;;  %v29_v31 = vld [vmem:[%s523_s0 + $0x78] sm:$0xff]  ;;  %v234_v32 = vld [vmem:[%s524_s2] ss:$0 sm:$0xff] }
   0xc   :  { %277 = vmatprep.subr.mxu0 %v40_v5  ;;  %328 = vmatprep.subr.mxu1 %v40_v5 }
   0xd   :  { %278 = vmatpush3.msra.mxu0 %v40_v5  ;;  %344 = vmatpush3.msra.mxu1 %v40_v5 }
   0xe   :  { %279 = vmatprep.subr.mxu0 %v39_v6  ;;  %329 = vmatprep.subr.mxu1 %v39_v6 }
   0xf   :  { %280 = vmatpush3.msra.mxu0 %v39_v6  ;;  %345 = vmatpush3.msra.mxu1 %v39_v6 }
  0x10   :  { %281 = vmatprep.subr.mxu0 %v38_v7  ;;  %330 = vmatprep.subr.mxu1 %v38_v7 }
  0x11   :  { %282 = vmatpush3.msra.mxu0 %v38_v7  ;;  %346 = vmatpush3.msra.mxu1 %v38_v7 }
  0x12   :  { %283 = vmatprep.subr.mxu0 %v37_v8  ;;  %331 = vmatprep.subr.mxu1 %v37_v8 }
  0x13   :  { %284 = vmatpush3.msra.mxu0 %v37_v8  ;;  %347 = vmatpush3.msra.mxu1 %v37_v8 }
  0x14   :  { %285 = vmatprep.subr.mxu0 %v36_v9  ;;  %332 = vmatprep.subr.mxu1 %v36_v9 }
  0x15   :  { %286 = vmatpush3.msra.mxu0 %v36_v9  ;;  %348 = vmatpush3.msra.mxu1 %v36_v9 }
  0x16   :  { %287 = vmatprep.subr.mxu0 %v35_v10  ;;  %333 = vmatprep.subr.mxu1 %v35_v10 }
  0x17   :  { %288 = vmatpush3.msra.mxu0 %v35_v10  ;;  %349 = vmatpush3.msra.mxu1 %v35_v10 }
  0x18   :  { %289 = vmatprep.subr.mxu0 %v34_v11  ;;  %334 = vmatprep.subr.mxu1 %v34_v11 }
  0x19   :  { %290 = vmatpush3.msra.mxu0 %v34_v11  ;;  %350 = vmatpush3.msra.mxu1 %v34_v11 }
  0x1a   :  { %291 = vmatprep.subr.mxu0 %v33_v12  ;;  %335 = vmatprep.subr.mxu1 %v33_v12 }
  0x1b   :  { %292 = vmatpush3.msra.mxu0 %v33_v12  ;;  %351 = vmatpush3.msra.mxu1 %v33_v12 }
  0x1c   :  { %293 = vmatprep.subr.mxu0 %v32_v13  ;;  %336 = vmatprep.subr.mxu1 %v32_v13 }
  0x1d   :  { %294 = vmatpush3.msra.mxu0 %v32_v13  ;;  %352 = vmatpush3.msra.mxu1 %v32_v13 }
  0x1e   :  { %295 = vmatprep.subr.mxu0 %v31_v14  ;;  %337 = vmatprep.subr.mxu1 %v31_v14 }
  0x1f   :  { %296 = vmatpush3.msra.mxu0 %v31_v14  ;;  %353 = vmatpush3.msra.mxu1 %v31_v14 }
  0x20   :  { %297 = vmatprep.subr.mxu0 %v30_v15  ;;  %338 = vmatprep.subr.mxu1 %v30_v15 }
  0x21   :  { %298 = vmatpush3.msra.mxu0 %v30_v15  ;;  %354 = vmatpush3.msra.mxu1 %v30_v15 }
  0x22   :  { %299 = vmatprep.mubr.f32.mxu0 %v14_v16  ;;  %311 = vmatprep.mubr.f32.mxu1 %v22_v17 }
  0x23   :  { %300 = vmatmul.mubr.f32.vlgmr.msra.gmra.mxu0 %v15_v18  ;;  %312 = vmatmul.mubr.f32.vlgmr.msra.gmra.mxu1 %v23_v19 }
  0x24   :  { %302 = vmatprep.mubr.f32.mxu0 %v16_v20  ;;  %314 = vmatprep.mubr.f32.mxu1 %v24_v21 }
  0x27   :  { %303 = vmatmul.mubr.f32.gmra.mxu0 %v17_v22  ;;  %315 = vmatmul.mubr.f32.gmra.mxu1 %v25_v23 }
  0x28   :  { %305 = vmatprep.mubr.f32.mxu0 %v18_v24  ;;  %317 = vmatprep.mubr.f32.mxu1 %v26_v25 }
  0x2b   :  { %306 = vmatmul.mubr.f32.gmra.mxu0 %v19_v26  ;;  %318 = vmatmul.mubr.f32.gmra.mxu1 %v27_v27 }
  0x2c   :  { %308 = vmatprep.mubr.f32.mxu0 %v20_v28  ;;  %320 = vmatprep.mubr.f32.mxu1 %v28_v29 }
  0x2f   :  { %309 = vmatmul.mubr.f32.gmra.mxu0 %v21_v30  ;;  %321 = vmatmul.mubr.f32.gmra.mxu1 %v29_v31 }
  0xe3   :  { %v301_v33 = vpop.f32.mrf.mxu0  ;;  %v313_v34 = vpop.f32.mrf.mxu1 }
  0xe4   :  { %v125_v35 = vadd.f32 %v301_v33, %v234_v32  ;;  %v165_v36 = vadd.f32 %v313_v34, %v234_v32 }
  0xe5   :  { %v119_v37 = vpop.f32.mrf.mxu0  ;;  %v159_v38 = vpop.f32.mrf.mxu1 }
  0xe6   :  { %v199_v39 = vmax.f32 %v125_v35, 0.0  ;;  %v207_v40 = vmax.f32 %v165_v36, 0.0  ;;  %v120_v41 = vadd.f32 %v234_v32, %v119_v37  ;;  %v160_v42 = vadd.f32 %v234_v32, %v159_v38 }
  0xe7   :  { %v304_v43 = vpop.f32.mrf.mxu0  ;;  %v316_v44 = vpop.f32.mrf.mxu1 }
  0xe8   :  { %215 = vst [vmem:[%s525_s3 + $0x8] sm:$0xff] %v199_v39  ;;  %223 = vst [vmem:[%s525_s3 + $0x48] sm:$0xff] %v207_v40  ;;  %v198_v45 = vmax.f32 %v120_v41, 0.0  ;;  %v206_v46 = vmax.f32 %v160_v42, 0.0  ;;  %v135_v47 = vadd.f32 %v304_v43, %v234_v32  ;;  %v175_v48 = vadd.f32 %v316_v44, %v234_v32 }
  0xe9   :  { %v129_v49 = vpop.f32.mrf.mxu0  ;;  %v169_v50 = vpop.f32.mrf.mxu1 }
  0xea   :  { %214 = vst [vmem:[%s525_s3] sm:$0xff] %v198_v45  ;;  %222 = vst [vmem:[%s525_s3 + $0x40] sm:$0xff] %v206_v46  ;;  %v201_v51 = vmax.f32 %v135_v47, 0.0  ;;  %v209_v52 = vmax.f32 %v175_v48, 0.0  ;;  %v130_v53 = vadd.f32 %v234_v32, %v129_v49  ;;  %v170_v54 = vadd.f32 %v234_v32, %v169_v50 }
  0xeb   :  { %v307_v55 = vpop.f32.mrf.mxu0  ;;  %v319_v56 = vpop.f32.mrf.mxu1 }
  0xec   :  { %217 = vst [vmem:[%s525_s3 + $0x18] sm:$0xff] %v201_v51  ;;  %225 = vst [vmem:[%s525_s3 + $0x58] sm:$0xff] %v209_v52  ;;  %v200_v57 = vmax.f32 %v130_v53, 0.0  ;;  %v208_v58 = vmax.f32 %v170_v54, 0.0  ;;  %v145_v59 = vadd.f32 %v307_v55, %v234_v32  ;;  %v185_v60 = vadd.f32 %v319_v56, %v234_v32 }
  0xed   :  { %v139_v61 = vpop.f32.mrf.mxu0  ;;  %v179_v62 = vpop.f32.mrf.mxu1 }
  0xee   :  { %216 = vst [vmem:[%s525_s3 + $0x10] sm:$0xff] %v200_v57  ;;  %224 = vst [vmem:[%s525_s3 + $0x50] sm:$0xff] %v208_v58  ;;  %v203_v63 = vmax.f32 %v145_v59, 0.0  ;;  %v211_v0 = vmax.f32 %v185_v60, 0.0  ;;  %v140_v1 = vadd.f32 %v234_v32, %v139_v61  ;;  %v180_v2 = vadd.f32 %v234_v32, %v179_v62 }
  0xef   :  { %v310_v3 = vpop.f32.mrf.mxu0  ;;  %v322_v4 = vpop.f32.mrf.mxu1 }
  0xf0   :  { %219 = vst [vmem:[%s525_s3 + $0x28] sm:$0xff] %v203_v63  ;;  %227 = vst [vmem:[%s525_s3 + $0x68] sm:$0xff] %v211_v0  ;;  %v202_v5 = vmax.f32 %v140_v1, 0.0  ;;  %v210_v6 = vmax.f32 %v180_v2, 0.0  ;;  %v155_v7 = vadd.f32 %v310_v3, %v234_v32  ;;  %v195_v8 = vadd.f32 %v322_v4, %v234_v32 }
  0xf1   :  { %v149_v9 = vpop.f32.mrf.mxu0  ;;  %v189_v10 = vpop.f32.mrf.mxu1 }
  0xf2   :  { %218 = vst [vmem:[%s525_s3 + $0x20] sm:$0xff] %v202_v5  ;;  %226 = vst [vmem:[%s525_s3 + $0x60] sm:$0xff] %v210_v6  ;;  %v205_v11 = vmax.f32 %v155_v7, 0.0  ;;  %v213_v12 = vmax.f32 %v195_v8, 0.0  ;;  %v150_v13 = vadd.f32 %v234_v32, %v149_v9  ;;  %v190_v14 = vadd.f32 %v234_v32, %v189_v10 }
  0xf4   :  { %221 = vst [vmem:[%s525_s3 + $0x38] sm:$0xff] %v205_v11  ;;  %229 = vst [vmem:[%s525_s3 + $0x78] sm:$0xff] %v213_v12  ;;  %v204_v15 = vmax.f32 %v150_v13, 0.0  ;;  %v212_v16 = vmax.f32 %v190_v14, 0.0 }
  0xf6   :  { %220 = vst [vmem:[%s525_s3 + $0x30] sm:$0xff] %v204_v15  ;;  %228 = vst [vmem:[%s525_s3 + $0x70] sm:$0xff] %v212_v16 }

// kernel: backbone_forward.4
= control target key start
LH: loop header
LB: loop body
LE: loop exit
PB: predicated region body
PF: predicated region fallthrough
CT: control target
= control target key end

     0   :  { %s324_s1 = inlined_call_operand.vmem [shape: f32[128,128], index: 1, kind: input, shape index: {}]   ;;  %s325_s0 = inlined_call_operand.vmem [shape: f32[32,128], index: 0, kind: input, shape index: {}]   ;;  %s326_s2 = inlined_call_operand.vmem [shape: f32[1,128], index: 2, kind: input, shape index: {}]   ;;  %s327_s3 = inlined_call_operand.vmem [shape: f32[32,128], index: 3, kind: output, shape index: {}]  }
   0x1   :  { %v33_v0 = vld [vmem:[%s324_s1 + $0x78] sm:$0xff]  ;;  %v32_v1 = vld [vmem:[%s324_s1 + $0x70] sm:$0xff]  ;;  %v31_v2 = vld [vmem:[%s324_s1 + $0x68] sm:$0xff] }
   0x2   :  { %159 = vmatprep.subr.mxu0 %v33_v0  ;;  %197 = vmatprep.subr.mxu1 %v33_v0  ;;  %v30_v3 = vld [vmem:[%s324_s1 + $0x60] sm:$0xff]  ;;  %v29_v4 = vld [vmem:[%s324_s1 + $0x58] sm:$0xff]  ;;  %v28_v5 = vld [vmem:[%s324_s1 + $0x50] sm:$0xff] }
   0x3   :  { %160 = vmatpush3.msra.mxu0 %v33_v0  ;;  %213 = vmatpush3.msra.mxu1 %v33_v0  ;;  %v27_v6 = vld [vmem:[%s324_s1 + $0x48] sm:$0xff]  ;;  %v26_v7 = vld [vmem:[%s324_s1 + $0x40] sm:$0xff]  ;;  %v25_v8 = vld [vmem:[%s324_s1 + $0x38] sm:$0xff] }
   0x4   :  { %161 = vmatprep.subr.mxu0 %v32_v1  ;;  %198 = vmatprep.subr.mxu1 %v32_v1  ;;  %v24_v9 = vld [vmem:[%s324_s1 + $0x30] sm:$0xff]  ;;  %v23_v10 = vld [vmem:[%s324_s1 + $0x28] sm:$0xff]  ;;  %v22_v11 = vld [vmem:[%s324_s1 + $0x20] sm:$0xff] }
   0x5   :  { %162 = vmatpush3.msra.mxu0 %v32_v1  ;;  %214 = vmatpush3.msra.mxu1 %v32_v1  ;;  %v21_v12 = vld [vmem:[%s324_s1 + $0x18] sm:$0xff]  ;;  %v20_v13 = vld [vmem:[%s324_s1 + $0x10] sm:$0xff]  ;;  %v19_v14 = vld [vmem:[%s324_s1 + $0x8] sm:$0xff] }
   0x6   :  { %163 = vmatprep.subr.mxu0 %v31_v2  ;;  %199 = vmatprep.subr.mxu1 %v31_v2  ;;  %v18_v15 = vld [vmem:[%s324_s1] sm:$0xff]  ;;  %v16_v17 = vld [vmem:[%s325_s0 + $0x10] sm:$0xff]  ;;  %v15_v18 = vld [vmem:[%s325_s0 + $0x8] sm:$0xff] }
   0x7   :  { %164 = vmatpush3.msra.mxu0 %v31_v2  ;;  %215 = vmatpush3.msra.mxu1 %v31_v2  ;;  %v14_v16 = vld [vmem:[%s325_s0] sm:$0xff]  ;;  %v17_v19 = vld [vmem:[%s325_s0 + $0x18] sm:$0xff] }
   0x8   :  { %165 = vmatprep.subr.mxu0 %v30_v3  ;;  %200 = vmatprep.subr.mxu1 %v30_v3  ;;  %v138_v20 = vld [vmem:[%s326_s2] ss:$0 sm:$0xff] }
   0x9   :  { %166 = vmatpush3.msra.mxu0 %v30_v3  ;;  %216 = vmatpush3.msra.mxu1 %v30_v3 }
   0xa   :  { %167 = vmatprep.subr.mxu0 %v29_v4  ;;  %201 = vmatprep.subr.mxu1 %v29_v4 }
   0xb   :  { %168 = vmatpush3.msra.mxu0 %v29_v4  ;;  %217 = vmatpush3.msra.mxu1 %v29_v4 }
   0xc   :  { %169 = vmatprep.subr.mxu0 %v28_v5  ;;  %202 = vmatprep.subr.mxu1 %v28_v5 }
   0xd   :  { %170 = vmatpush3.msra.mxu0 %v28_v5  ;;  %218 = vmatpush3.msra.mxu1 %v28_v5 }
   0xe   :  { %171 = vmatprep.subr.mxu0 %v27_v6  ;;  %203 = vmatprep.subr.mxu1 %v27_v6 }
   0xf   :  { %172 = vmatpush3.msra.mxu0 %v27_v6  ;;  %219 = vmatpush3.msra.mxu1 %v27_v6 }
  0x10   :  { %173 = vmatprep.subr.mxu0 %v26_v7  ;;  %204 = vmatprep.subr.mxu1 %v26_v7 }
  0x11   :  { %174 = vmatpush3.msra.mxu0 %v26_v7  ;;  %220 = vmatpush3.msra.mxu1 %v26_v7 }
  0x12   :  { %175 = vmatprep.subr.mxu0 %v25_v8  ;;  %205 = vmatprep.subr.mxu1 %v25_v8 }
  0x13   :  { %176 = vmatpush3.msra.mxu0 %v25_v8  ;;  %221 = vmatpush3.msra.mxu1 %v25_v8 }
  0x14   :  { %177 = vmatprep.subr.mxu0 %v24_v9  ;;  %206 = vmatprep.subr.mxu1 %v24_v9 }
  0x15   :  { %178 = vmatpush3.msra.mxu0 %v24_v9  ;;  %222 = vmatpush3.msra.mxu1 %v24_v9 }
  0x16   :  { %179 = vmatprep.subr.mxu0 %v23_v10  ;;  %207 = vmatprep.subr.mxu1 %v23_v10 }
  0x17   :  { %180 = vmatpush3.msra.mxu0 %v23_v10  ;;  %223 = vmatpush3.msra.mxu1 %v23_v10 }
  0x18   :  { %181 = vmatprep.subr.mxu0 %v22_v11  ;;  %208 = vmatprep.subr.mxu1 %v22_v11 }
  0x19   :  { %182 = vmatpush3.msra.mxu0 %v22_v11  ;;  %224 = vmatpush3.msra.mxu1 %v22_v11 }
  0x1a   :  { %183 = vmatprep.subr.mxu0 %v21_v12  ;;  %209 = vmatprep.subr.mxu1 %v21_v12 }
  0x1b   :  { %184 = vmatpush3.msra.mxu0 %v21_v12  ;;  %225 = vmatpush3.msra.mxu1 %v21_v12 }
  0x1c   :  { %185 = vmatprep.subr.mxu0 %v20_v13  ;;  %210 = vmatprep.subr.mxu1 %v20_v13 }
  0x1d   :  { %186 = vmatpush3.msra.mxu0 %v20_v13  ;;  %226 = vmatpush3.msra.mxu1 %v20_v13 }
  0x1e   :  { %187 = vmatprep.subr.mxu0 %v19_v14  ;;  %211 = vmatprep.subr.mxu1 %v19_v14 }
  0x1f   :  { %188 = vmatpush3.msra.mxu0 %v19_v14  ;;  %227 = vmatpush3.msra.mxu1 %v19_v14 }
  0x20   :  { %189 = vmatprep.subr.mxu0 %v18_v15  ;;  %212 = vmatprep.subr.mxu1 %v18_v15 }
  0x21   :  { %190 = vmatpush3.msra.mxu0 %v18_v15  ;;  %228 = vmatpush3.msra.mxu1 %v18_v15 }
  0x22   :  { %191 = vmatprep.mubr.f32.mxu0 %v14_v16  ;;  %194 = vmatprep.mubr.f32.mxu1 %v16_v17 }
  0x23   :  { %192 = vmatmul.mubr.f32.vlgmr.msra.gmra.mxu0 %v15_v18  ;;  %195 = vmatmul.mubr.f32.vlgmr.msra.gmra.mxu1 %v17_v19 }
  0xe3   :  { %v193_v21 = vpop.f32.mrf.mxu0  ;;  %v196_v22 = vpop.f32.mrf.mxu1 }
  0xe4   :  { %v113_v23 = vadd.f32 %v193_v21, %v138_v20  ;;  %v123_v24 = vadd.f32 %v196_v22, %v138_v20 }
  0xe5   :  { %v107_v25 = vpop.f32.mrf.mxu0  ;;  %v117_v26 = vpop.f32.mrf.mxu1 }
  0xe6   :  { %v127_v27 = vmax.f32 %v113_v23, 0.0  ;;  %v129_v28 = vmax.f32 %v123_v24, 0.0  ;;  %v108_v29 = vadd.f32 %v138_v20, %v107_v25  ;;  %v118_v30 = vadd.f32 %v138_v20, %v117_v26 }
  0xe8   :  { %131 = vst [vmem:[%s327_s3 + $0x8] sm:$0xff] %v127_v27  ;;  %133 = vst [vmem:[%s327_s3 + $0x18] sm:$0xff] %v129_v28  ;;  %v126_v31 = vmax.f32 %v108_v29, 0.0  ;;  %v128_v32 = vmax.f32 %v118_v30, 0.0 }
  0xea   :  { %130 = vst [vmem:[%s327_s3] sm:$0xff] %v126_v31  ;;  %132 = vst [vmem:[%s327_s3 + $0x10] sm:$0xff] %v128_v32 }

// kernel: backbone_forward.5
= control target key start
LH: loop header
LB: loop body
LE: loop exit
PB: predicated region body
PF: predicated region fallthrough
CT: control target
= control target key end

     0   :  { %s5469_s6 = smov 1   ;;  %s5470_s10 = smov 2   ;;  %s6125_s0 = inlined_call_operand.smem [shape: u32[32], index: -1, kind: input, shape index: {}] }
   0x1   :  { %s5514_s5 = sld [smem:[%s6125_s0]]   ;;  %s5471_s14 = smov 3  }
   0x2   :  { %s5519_s9 = sld [smem:[%s6125_s0 + %s5469_s6]]   ;;  %s5472_s18 = smov 4  }
   0x3   :  { %s5524_s13 = sld [smem:[%s6125_s0 + %s5470_s10]]   ;;  %s5473_s22 = smov 5  }
   0x4   :  { %s5529_s17 = sld [smem:[%s6125_s0 + %s5471_s14]]   ;;  %s5474_s26 = smov 6  }
   0x5   :  { %s5534_s21 = sld [smem:[%s6125_s0 + %s5472_s18]]   ;;  %s5475_s30 = smov 7  }
   0x6   :  { %s5539_s25 = sld [smem:[%s6125_s0 + %s5473_s22]]   ;;  %s5476_s4 = smov 8  }
   0x7   :  { %s5544_s29 = sld [smem:[%s6125_s0 + %s5474_s26]]   ;;  %s5477_s10 = smov 9  }
   0x8   :  { %s5549_s3 = sld [smem:[%s6125_s0 + %s5475_s30]]   ;;  %s5478_s15 = smov 10  }
   0x9   :  { %s5554_s8 = sld [smem:[%s6125_s0 + %s5476_s4]]   ;;  %s5479_s20 = smov 11  }
   0xa   :  { %s5559_s14 = sld [smem:[%s6125_s0 + %s5477_s10]]   ;;  %s5480_s26 = smov 12  }
   0xb   :  { %s5564_s19 = sld [smem:[%s6125_s0 + %s5478_s15]]   ;;  %s5481_s1 = smov 13  }
   0xc   :  { %s5569_s24 = sld [smem:[%s6125_s0 + %s5479_s20]]   ;;  %s5482_s7 = smov 14  }
   0xd   :  { %s5574_s30 = sld [smem:[%s6125_s0 + %s5480_s26]]   ;;  %s5483_s15 = smov 15  }
   0xe   :  { %s5579_s6 = sld [smem:[%s6125_s0 + %s5481_s1]]   ;;  %s5484_s22 = smov 16  }
   0xf   :  { %s5584_s12 = sld [smem:[%s6125_s0 + %s5482_s7]]   ;;  %s5485_s28 = smov 17  }
  0x10   :  { %s5589_s20 = sld [smem:[%s6125_s0 + %s5483_s15]]   ;;  %s5486_s7 = smov 18  }
  0x11   :  { %s5594_s27 = sld [smem:[%s6125_s0 + %s5484_s22]]   ;;  %s5487_s15 = smov 19  }
  0x12   :  { %s5599_s4 = sld [smem:[%s6125_s0 + %s5485_s28]]   ;;  %s5488_s22 = smov 20  }
  0x13   :  { %6130 = sst [smem:[#allocation5_spill]] %s5574_s30  ;;  %s5489_s28 = smov 21  }
  0x14   :  { %s5604_s30 = sld [smem:[%s6125_s0 + %s5486_s7]]   ;;  %s5490_s7 = smov 22  }
  0x15   :  { %6131 = sst [smem:[#allocation6_spill]] %s5584_s12 }
  0x16   :  { %s5609_s12 = sld [smem:[%s6125_s0 + %s5487_s15]]   ;;  %s5491_s15 = smov 23  }
  0x17   :  { %6132 = sst [smem:[#allocation7_spill]] %s5594_s27 }
  0x18   :  { %6133 = sst [smem:[#allocation8_spill]] %s5599_s4 }
  0x19   :  { %s5614_s27 = sld [smem:[%s6125_s0 + %s5488_s22]]   ;;  %s5492_s22 = smov 24  }
  0x1a   :  { %6134 = sst [smem:[#allocation9_spill]] %s5604_s30 }
  0x1b   :  { %s5619_s4 = sld [smem:[%s6125_s0 + %s5489_s28]]   ;;  %s5493_s28 = smov 25  }
  0x1c   :  { %6135 = sst [smem:[#allocation10_spill]] %s5609_s12 }
  0x1d   :  { %s5624_s30 = sld [smem:[%s6125_s0 + %s5490_s7]]   ;;  %s5494_s7 = smov 26  }
  0x1e   :  { %s5629_s12 = sld [smem:[%s6125_s0 + %s5491_s15]]   ;;  %s5495_s15 = smov 27  }
  0x1f   :  { %6136 = sst [smem:[#allocation11_spill]] %s5614_s27 }
  0x20   :  { %s5634_s27 = sld [smem:[%s6125_s0 + %s5492_s22]]   ;;  %s5496_s22 = smov 28  }
  0x21   :  { %6137 = sst [smem:[#allocation12_spill]] %s5619_s4 }
  0x22   :  { %s5639_s4 = sld [smem:[%s6125_s0 + %s5493_s28]]   ;;  %s5497_s28 = smov 29  }
  0x23   :  { %6138 = sst [smem:[#allocation13_spill]] %s5624_s30 }
  0x24   :  { %6139 = sst [smem:[#allocation14_spill]] %s5629_s12 }
  0x25   :  { %s5644_s30 = sld [smem:[%s6125_s0 + %s5494_s7]]   ;;  %s5498_s7 = smov 30  }
  0x26   :  { %6140 = sst [smem:[#allocation15_spill]] %s5634_s27 }
  0x27   :  { %s5649_s12 = sld [smem:[%s6125_s0 + %s5495_s15]]   ;;  %s5499_s15 = smov 31  }
  0x28   :  { %6141 = sst [smem:[#allocation16_spill]] %s5639_s4 }
  0x29   :  { %s5654_s27 = sld [smem:[%s6125_s0 + %s5496_s22]]  }
  0x2a   :  { %s5659_s4 = sld [smem:[%s6125_s0 + %s5497_s28]]  }
  0x2b   :  { %6142 = sst [smem:[#allocation17_spill]] %s5644_s30 }
  0x2c   :  { %s5664_s30 = sld [smem:[%s6125_s0 + %s5498_s7]]  }
  0x2d   :  { %6143 = sst [smem:[#allocation18_spill]] %s5649_s12 }
  0x2e   :  { %s5669_s12 = sld [smem:[%s6125_s0 + %s5499_s15]]  }
  0x2f   :  { %v158_v0 = vld [vmem:[%s5529_s17 + $0x8] sm:$0xff]  ;;  %v157_v1 = vld [vmem:[%s5529_s17] sm:$0xff]  ;;  %vm135_vm0 = vcmask 130048   ;;  %v5500_v3 = vmov 0.0   ;;  %vm5501_vm1 = vmmov 0   ;;  %v133_v5 = vld [vmem:[%s5514_s5 + $0x10] sm:$0xff] }
  0x30   :  { %v131_v2 = vld [vmem:[%s5514_s5] sm:$0xff]  ;;  %5217 = vmatprep.subr.mxu0 %v5500_v3  ;;  %5221 = vmatprep.mubr.msk.f32.mxu0 %vm5501_vm1, %v5500_v3  ;;  %v132_v4 = vld [vmem:[%s5514_s5 + $0x8] sm:$0xff]  ;;  %v134_v6 = vld [vmem:[%s5514_s5 + $0x18] sm:$0xff]  ;;  %v145_v9 = vsel %vm135_vm0, %v133_v5, 0.0  ;;  %v5502_v14 = vmov 0  }
  0x31   :  { %v136_v7 = vsel %vm135_vm0, %v131_v2, 0.0  ;;  %5218 = vmatpush3.msra.mxu0 %v158_v0  ;;  %v137_v8 = vsel %vm135_vm0, %v132_v4, 0.0  ;;  %v146_v10 = vsel %vm135_vm0, %v134_v6, 0.0  ;;  %5229 = vmatprep.subr.mxu1 %v5500_v3  ;;  %v415_v13 = vld [vmem:[%s5524_s13] sm:$0x3] }
  0x32   :  { %5219 = vmatprep.subr.mxu0 %v5500_v3  ;;  %v138_v11 = vadd.f32 %v137_v8, %v136_v7  ;;  %v147_v12 = vadd.f32 %v146_v10, %v145_v9  ;;  %5237 = vmatprep.mubr.msk.f32.mxu1 %vm5501_vm1, %v5500_v3 }
  0x33   :  { %5220 = vmatpush3.msra.mxu0 %v157_v1  ;;  %5432 = vset.pattern.permute.xlu0 %v5502_v14 }
  0x34   :  { %68 = vsyncpa [#allocation3], 0  ;;  %5224 = vmatprep.subr.mxu0 %v5500_v3  ;;  %v139_v15 = vrot.slane %v138_v11, 4  ;;  %v148_v16 = vrot.slane %v147_v12, 4  ;;  %419 = vperm.xlu0 %5432, %v415_v13   ;;  %vm168_vm2 = vcmask 1041409   ;;  %vm255_vm3 = vcmask 1046528  }
  0x35   :  { %v243_v29 = vld [vmem:[%s5539_s25] sm:$0x7f]  ;;  %vm251_vm4 = vcmask 56320   ;;  %v333_v32 = vld [vmem:[%s5549_s3 + $0x18] sm:$0xff]  ;;  %v332_v33 = vld [vmem:[%s5549_s3 + $0x10] sm:$0xff]  ;;  %vm436_vm5 = vcmask 1043456   ;;  %v416_v37 = vlaneseq }
  0x36   :  { %v140_v17 = vadd.f32 %v139_v15, %v138_v11  ;;  %v149_v18 = vadd.f32 %v148_v16, %v147_v12  ;;  %v242_v31 = vld [vmem:[%s5519_s9] sm:$0x3]  ;;  %5230 = vmatpush3.msra.mxu1 %v333_v32  ;;  %v331_v34 = vld [vmem:[%s5549_s3 + $0x8] sm:$0xff]  ;;  %vm432_vm6 = vcmask 31744   ;;  %v522_v41 = vld [vmem:[%s5569_s24 + $0x18] sm:$0xff]  ;;  %vm341_vm8 = vcmask 261120  }
  0x37   :  { %5231 = vmatprep.subr.mxu1 %v5500_v3  ;;  %v424_v35 = vld [vmem:[%s5559_s14] sm:$0xf]  ;;  %v417_v38 = vand.u32 127, %v416_v37  ;;  %v625_v49 = vld [vmem:[%s5579_s6 + $0x18] sm:$0xff]  ;;  %v521_v50 = vld [vmem:[%s5569_s24 + $0x10] sm:$0xff]  ;;  %vm516_vm9 = vcmask 1041408  }
  0x38   :  { %v141_v19 = vrot.slane %v140_v17, 2  ;;  %v150_v20 = vrot.slane %v149_v18, 2  ;;  %5232 = vmatpush3.msra.mxu1 %v332_v33  ;;  %v330_v36 = vld [vmem:[%s5549_s3] sm:$0xff]  ;;  %v624_v51 = vld [vmem:[%s5579_s6 + $0x10] sm:$0xff]  ;;  %v520_v52 = vld [vmem:[%s5569_s24 + $0x8] sm:$0xff]  ;;  %s6144_s0 = sld [smem:[#allocation6_spill]] }
  0x39   :  { %5233 = vmatprep.subr.mxu1 %v5500_v3  ;;  %v5092_v44 = vld [vmem:[%s5544_s29] ss:$0 sm:$0xff]  ;;  %v623_v53 = vld [vmem:[%s5579_s6 + $0x8] sm:$0xff]  ;;  %v726_v6 = vld [vmem:[%s5589_s20 + $0x18] sm:$0xff]  ;;  %v5503_v11 = vmov 1983009808  }
  0x3a   :  { %v142_v21 = vadd.f32 %v141_v19, %v140_v17  ;;  %v151_v22 = vadd.f32 %v150_v20, %v149_v18  ;;  %5234 = vmatpush3.msra.mxu1 %v331_v34  ;;  %v519_v54 = vld [vmem:[%s5569_s24] sm:$0xff]  ;;  %v725_v8 = vld [vmem:[%s5589_s20 + $0x10] sm:$0xff]  ;;  %v724_v9 = vld [vmem:[%s5589_s20 + $0x8] sm:$0xff]  ;;  %v606_v12 = vunpack.c.l.s4 %v5503_v11  ;;  %v609_v14 = vshrl.u32 %v416_v37, 7  ;;  %s6145_s5 = sld [smem:[#allocation5_spill]] }
  0x3b   :  { %5235 = vmatprep.subr.mxu1 %v5500_v3  ;;  %v622_v55 = vld [vmem:[%s5579_s6] sm:$0xff]  ;;  %v5504_v33 = vmov 1934713408   ;;  %s6146_s9 = sld [smem:[#allocation7_spill]]  ;;  %vm2596_vm10 = vcmask 18432   ;;  %vm4207_vm11 = vcmask 23552  }
  0x3c   :  { %v143_v23 = vrot.slane %v142_v21, 1  ;;  %v152_v24 = vrot.slane %v151_v22, 1  ;;  %5236 = vmatpush3.msra.mxu1 %v330_v36  ;;  %v5098_v58 = vld [vmem:[%s5564_s19] ss:$0 sm:$0xff]  ;;  %v607_v13 = vunpack.c.0.s8 %v606_v12  ;;  %v826_v34 = vunpack.c.l.s4 %v5504_v33  ;;  %s6147_s13 = sld [smem:[#allocation8_spill]] }
  0x3d   :  { %5256 = vmatprep.subr.mxu1 %v5500_v3  ;;  %v5095_v60 = vld [vmem:[%s5554_s8] ss:$0 sm:$0xff]  ;;  %s6148_s17 = sld [smem:[#allocation9_spill]]  ;;  %vm4606_vm12 = vcmask 259072   ;;  %vm4865_vm13 = vcmask 254976   ;;  %vm5043_vm14 = vcmask 50176  }
  0x3e   :  { %v144_v25 = vadd.f32 %v143_v23, %v142_v21  ;;  %v153_v26 = vadd.f32 %v152_v24, %v151_v22  ;;  %v5090_v61 = vld [vmem:[%s5534_s21] ss:$0 sm:$0xff]  ;;  %v5761_v16 = vsub.s32 %v607_v13, %v609_v14  ;;  %v827_v37 = vunpack.c.0.s8 %v826_v34  ;;  %s6149_s21 = sld [smem:[#allocation12_spill]] }
  0x3f   :  { %v723_v10 = vld [vmem:[%s5589_s20] sm:$0xff]  ;;  %s6150_s25 = sld [smem:[#allocation14_spill]]  ;;  %s5505_s20 = smov [#allocation2]  }
  0x40   :  { %v155_v27 = vmul.f32 0.0625, %v144_v25  ;;  %v156_v28 = vmul.f32 0.0625, %v153_v26  ;;  %v5103_v15 = vld [vmem:[%s6144_s0] ss:$0 sm:$0xff]  ;;  %s6151_s29 = sld [smem:[#allocation10_spill]]  ;;  %s5051_s22 = sshll.u32 %s5505_s20, 4  ;;  %s5052_s22 = int_to_ptr.vmem [resolvable:$true] %s5051_s22 }
  0x41   :  { %s6152_s3 = sld [smem:[#allocation11_spill]]  ;;  %p5452_p1 = scmp.lt.s32.totalorder %s5052_s22, %s5052_s22 }
  0x42   :  { %v169_v30 = vsel %vm168_vm2, %v156_v28, %v155_v27  ;;  %s6153_s8 = sld [smem:[#allocation13_spill]] }
  0x43   :  { %5222 = vmatmul.mubr.msk.f32.vlgmr.msra.gmra.mxu0 %vm135_vm0, %v169_v30  ;;  %s6154_s14 = sld [smem:[#allocation15_spill]] }
  0x44   :  { %5225 = vmatpush3.msk.msra.mxu0 %vm255_vm3, %v243_v29  ;;  %5226 = vmatprep.mubr.msk.f32.mxu0 %vm5501_vm1, %v5500_v3  ;;  %s6155_s19 = sld [smem:[#allocation18_spill]] }
  0x45   :  { %5240 = vmatprep.subr.mxu0 %v5500_v3  ;;  %s6156_s24 = sld [smem:[#allocation16_spill]] }
  0x46   :  { %s6157_s6 = sld [smem:[#allocation17_spill]] }
  0x47   :  { %5227 = vmatmul.mubr.msk.f32.vlgmr.msra.gmra.mxu0 %vm251_vm4, %v242_v31 }
  0x48   :  { %5242 = vmatprep.mubr.msk.f32.mxu0 %vm5501_vm1, %v5500_v3  ;;  %5241 = vmatpush3.msk.msra.mxu0 %vm436_vm5, %v424_v35 }
  0x49   :  { %5245 = vmatprep.subr.mxu0 %v5500_v3 }
  0xaf   :  { %v420_v39 = vpop.permute.xlu0 %419 }
  0xb0   :  { %vm421_vm7 = vcmp.eq.s32.totalorder %v417_v38, %v420_v39 }
  0xb1   :  { %v5097_v40 = vsel %vm421_vm7, 1.0, %v5500_v3 }
  0xb2   :  { %5243 = vmatmul.mubr.msk.f32.vlgmr.msra.gmra.mxu0 %vm432_vm6, %v5097_v40 }
  0xb3   :  { %5253 = vmatprep.mubr.msk.f32.mxu0 %vm5501_vm1, %v5500_v3  ;;  %5246 = vmatpush3.msra.mxu0 %v522_v41 }
  0xb4   :  { %5247 = vmatprep.subr.mxu0 %v5500_v3 }
  0xb5   :  { %5248 = vmatpush3.msra.mxu0 %v521_v50 }
  0xb6   :  { %5249 = vmatprep.subr.mxu0 %v5500_v3 }
  0xb7   :  { %5250 = vmatpush3.msra.mxu0 %v520_v52 }
  0xb8   :  { %5251 = vmatprep.subr.mxu0 %v5500_v3 }
  0xb9   :  { %5252 = vmatpush3.msra.mxu0 %v519_v54 }
  0xba   :  { %5267 = vmatprep.subr.mxu0 %v5500_v3 }
 0x103   :  { %v238_v42 = vpop.f32.mrf.mxu0 }
 0x104   :  { %v239_v2 = vadd.f32 %v5090_v61, %v238_v42 }
 0x105   :  { %v5223_v43 = vpop.f32.mrf.mxu0 }
 0x106   :  { %v5782_v43 = vsub.s32 %v827_v37, %v609_v14 }
 0x107   :  { %v325_v45 = vpop.f32.mrf.mxu0 }
 0x108   :  { %v326_v46 = vadd.f32 %v5092_v44, %v325_v45 }
 0x109   :  { %v5228_v47 = vpop.f32.mrf.mxu0 }
 0x10a   :  { %v329_v48 = vmax.f32 %v326_v46, 0.0 }
 0x10c   :  { %5238 = vmatmul.mubr.msk.f32.vlgmr.msra.gmra.mxu1 %vm341_vm8, %v329_v48 }
 0x10d   :  { %5264 = vmatprep.mubr.msk.f32.mxu1 %vm5501_vm1, %v5500_v3  ;;  %5257 = vmatpush3.msra.mxu1 %v625_v49 }
 0x10e   :  { %5258 = vmatprep.subr.mxu1 %v5500_v3 }
 0x10f   :  { %5259 = vmatpush3.msra.mxu1 %v624_v51 }
 0x110   :  { %5260 = vmatprep.subr.mxu1 %v5500_v3 }
 0x111   :  { %5261 = vmatpush3.msra.mxu1 %v623_v53 }
 0x112   :  { %5262 = vmatprep.subr.mxu1 %v5500_v3 }
 0x113   :  { %5263 = vmatpush3.msra.mxu1 %v622_v55 }
 0x114   :  { %5278 = vmatprep.subr.mxu1 %v5500_v3 }
 0x172   :  { %v506_v56 = vpop.f32.mrf.mxu0 }
 0x173   :  { %v507_v59 = vadd.f32 %v5098_v58, %v506_v56 }
 0x174   :  { %v5244_v57 = vpop.f32.mrf.mxu0 }
 0x175   :  { %v514_v0 = vrot.slane %v507_v59, 4 }
 0x1cc   :  { %v411_v62 = vpop.f32.mrf.mxu1 }
 0x1cd   :  { %v412_v63 = vadd.f32 %v5095_v60, %v411_v62 }
 0x1ce   :  { %v5239_v1 = vpop.f32.mrf.mxu1 }
 0x1cf   :  { %v511_v4 = vrot.slane %v412_v63, 6 }
 0x1d1   :  { %v517_v5 = vsel %vm516_vm9, %v239_v2, %v511_v4 }
 0x1d2   :  { %v5738_v7 = vsel %vm436_vm5, %v517_v5, %v514_v0 }
 0x1d3   :  { %5254 = vmatmul.mubr.msk.f32.vlgmr.msra.gmra.mxu0 %vm341_vm8, %v5738_v7  ;;  %5265 = vmatmul.mubr.msk.f32.vlgmr.msra.gmra.mxu1 %vm341_vm8, %v5738_v7 }
 0x1d4   :  { %5268 = vmatpush3.msra.mxu0 %v726_v6  ;;  %5275 = vmatprep.mubr.msk.f32.mxu0 %vm5501_vm1, %v5500_v3 }
 0x1d5   :  { %5269 = vmatprep.subr.mxu0 %v5500_v3  ;;  %5286 = vmatprep.mubr.msk.f32.mxu1 %vm5501_vm1, %v5500_v3 }
 0x1d6   :  { %5270 = vmatpush3.msra.mxu0 %v725_v8 }
 0x1d7   :  { %5271 = vmatprep.subr.mxu0 %v5500_v3 }
 0x1d8   :  { %5272 = vmatpush3.msra.mxu0 %v724_v9 }
 0x1d9   :  { %5273 = vmatprep.subr.mxu0 %v5500_v3 }
 0x1da   :  { %5274 = vmatpush3.msra.mxu0 %v723_v10 }
 0x1db   :  { %5276 = vmatmul.mubr.msk.f32.vlgmr.msra.gmra.mxu0 %vm341_vm8, %v5738_v7  ;;  %5289 = vmatprep.subr.mxu0 %v5500_v3 }
 0x1dc   :  { %5297 = vmatprep.mubr.msk.f32.mxu0 %vm5501_vm1, %v5500_v3 }
 0x293   :  { %v5763_v17 = vpop.f32.mrf.mxu0  ;;  %v699_v18 = vpop.f32.mrf.mxu1 }
 0x294   :  { %v700_v19 = vadd.f32 %v5103_v15, %v699_v18 }
 0x295   :  { %v5255_v20 = vpop.f32.mrf.mxu0  ;;  %v5266_v21 = vpop.f32.mrf.mxu1 }
 0x296   :  { %v711_v22 = vrot.slane %v700_v19, %v5761_v16  ;;  %v704_v26 = vcombine.high %v700_v19, %v700_v19 }
 0x298   :  { %842 = vxpose.xlu0.b32.start.end [1/1] (short) (narrow) %v711_v22, 32  ;;  %v719_v23 = vcombine.high %v711_v22, %v711_v22  ;;  %v718_v27 = vrot.slane %v704_v26, %v5761_v16 }
 0x29a   :  { %874 = vxpose.xlu1.b32.start.end [1/1] (short) (narrow) %v719_v23, 32 }
 0x29b   :  { %v5766_v24 = vpop.f32.mrf.mxu0 }
 0x29d   :  { %v5277_v25 = vpop.f32.mrf.mxu0 }
 0x2a7   :  { %906 = vxpose.xlu1.b32.start.end [1/1] (short) (narrow) %v718_v27, 32 }
 0x314   :  { %v5773_v32 = vpop.trf.xlu0 }
 0x316   :  { %v5769_v28 = vpop.trf.xlu1 }
 0x317   :  { %v961_v40 = vrot.slane %v5769_v28, %v5761_v16 }
 0x318   :  { %v859_v38 = vpop.trf.xlu0 }
 0x31a   :  { %v891_v29 = vpop.trf.xlu1 }
 0x31b   :  { %v1028_v47 = vrot.slane %v891_v29, %v5761_v16  ;;  %v1021_v53 = vcombine.high %v891_v29, %v5500_v3 }
 0x31c   :  { %v860_v58 = vpop.trf.xlu0 }
 0x31d   :  { %v1035_v60 = vrot.slane %v1021_v53, %v5761_v16 }
 0x31e   :  { %v892_v30 = vpop.trf.xlu1 }
 0x31f   :  { %v1095_v6 = vrot.slane %v892_v30, %v5761_v16  ;;  %v1088_v12 = vcombine.high %v892_v30, %v5500_v3 }
 0x320   :  { %v861_v20 = vpop.trf.xlu0 }
 0x321   :  { %v1102_v19 = vrot.slane %v1088_v12, %v5761_v16 }
 0x322   :  { %v5771_v31 = vpop.trf.xlu1 }
 0x323   :  { %v1155_v34 = vcombine.high %v5771_v31, %v5500_v3  ;;  %v1162_v37 = vrot.slane %v5771_v31, %v5761_v16 }
 0x326   :  { %v5775_v35 = vpop.trf.xlu1 }
 0x327   :  { %v938_v36 = vcombine.low %v5773_v32, %v5775_v35 }
 0x329   :  { %v946_v39 = vrot.slane %v938_v36, %v5761_v16 }
 0x32a   :  { %v923_v41 = vpop.trf.xlu1 }
 0x32b   :  { %v1005_v42 = vcombine.low %v859_v38, %v923_v41  ;;  %v969_v44 = vcombine.low %v946_v39, %v961_v40  ;;  %v970_v45 = vcombine.high %v946_v39, %v961_v40  ;;  %v1006_v49 = vcombine.high %v859_v38, %v923_v41 }
 0x32c   :  { %v939_v38 = vcombine.high %v5773_v32, %v5775_v35 }
 0x32d   :  { %v1013_v46 = vrot.slane %v1005_v42, %v5761_v16  ;;  %v977_v48 = vrot.slane %v969_v44, %v5782_v43  ;;  %v984_v51 = vrot.slane %v970_v45, %v5782_v43  ;;  %v1020_v54 = vrot.slane %v1006_v49, %v5761_v16 }
 0x32e   :  { %v924_v59 = vpop.trf.xlu1  ;;  %v954_v42 = vcombine.high %v5769_v28, %v5500_v3  ;;  %v1169_v45 = vrot.slane %v1155_v34, %v5761_v16 }
 0x32f   :  { %1206 = vxpose.xlu1.b32.start.end [1/1] (short) (narrow) %v977_v48, 8  ;;  %v1001_v50 = vcombine.high %v977_v48, %v5500_v3  ;;  %v1036_v52 = vcombine.low %v1013_v46, %v1028_v47  ;;  %v1002_v55 = vcombine.high %v984_v51, %v5500_v3  ;;  %v1037_v57 = vcombine.high %v1013_v46, %v1028_v47 }
 0x330   :  { %v1072_v61 = vcombine.low %v860_v58, %v924_v59  ;;  %v1052_v0 = vcombine.low %v1020_v54, %v1035_v60  ;;  %v1053_v5 = vcombine.high %v1020_v54, %v1035_v60  ;;  %v1073_v8 = vcombine.high %v860_v58, %v924_v59 }
 0x331   :  { %1238 = vxpose.xlu0.b32.start.end [1/1] (short) (narrow) %v1001_v50, 8  ;;  %v1044_v56 = vrot.slane %v1036_v52, %v5782_v43  ;;  %v1051_v63 = vrot.slane %v1037_v57, %v5782_v43  ;;  %v953_v46 = vrot.slane %v939_v38, %v5761_v16  ;;  %v968_v35 = vrot.slane %v954_v42, %v5761_v16 }
 0x332   :  { %v1080_v1 = vrot.slane %v1072_v61, %v5761_v16  ;;  %v1060_v4 = vrot.slane %v1052_v0, %v5782_v43  ;;  %v1067_v10 = vrot.slane %v1053_v5, %v5782_v43  ;;  %v1087_v13 = vrot.slane %v1073_v8, %v5761_v16  ;;  %v925_v21 = vpop.trf.xlu1 }
 0x333   :  { %1270 = vxpose.xlu1.b32.start.end [1/1] (short) (narrow) %v984_v51, 8  ;;  %v1068_v62 = vcombine.high %v1044_v56, %v5500_v3  ;;  %v1069_v2 = vcombine.high %v1051_v63, %v5500_v3  ;;  %v1139_v26 = vcombine.low %v861_v20, %v925_v21  ;;  %v1140_v27 = vcombine.high %v861_v20, %v925_v21 }
 0x334   :  { %v1070_v9 = vcombine.high %v1060_v4, %v5500_v3  ;;  %v1103_v11 = vcombine.low %v1080_v1, %v1095_v6  ;;  %v1071_v14 = vcombine.high %v1067_v10, %v5500_v3  ;;  %v1104_v18 = vcombine.high %v1080_v1, %v1095_v6 }
 0x335   :  { %1302 = vxpose.xlu0.b32.start.end [1/1] (short) (narrow) %v1002_v55, 8  ;;  %v1119_v25 = vcombine.low %v1087_v13, %v1102_v19  ;;  %v1120_v33 = vcombine.high %v1087_v13, %v1102_v19  ;;  %v1147_v36 = vrot.slane %v1139_v26, %v5761_v16  ;;  %v1154_v39 = vrot.slane %v1140_v27, %v5761_v16 }
 0x336   :  { %v1111_v15 = vrot.slane %v1103_v11, %v5782_v43  ;;  %v1118_v23 = vrot.slane %v1104_v18, %v5782_v43  ;;  %v985_v50 = vcombine.low %v953_v46, %v968_v35  ;;  %v986_v53 = vcombine.high %v953_v46, %v968_v35 }
 0x337   :  { %1462 = vxpose.xlu1.b32.start.end [1/1] (short) (narrow) %v1044_v56, 8  ;;  %v1127_v30 = vrot.slane %v1119_v25, %v5782_v43  ;;  %v1134_v41 = vrot.slane %v1120_v33, %v5782_v43  ;;  %v1170_v44 = vcombine.low %v1147_v36, %v1162_v37  ;;  %v1171_v31 = vcombine.high %v1147_v36, %v1162_v37 }
 0x338   :  { %v1135_v22 = vcombine.high %v1111_v15, %v5500_v3  ;;  %v1136_v29 = vcombine.high %v1118_v23, %v5500_v3  ;;  %v1187_v32 = vcombine.high %v1154_v39, %v1169_v45  ;;  %v1186_v49 = vcombine.low %v1154_v39, %v1169_v45 }
 0x339   :  { %1494 = vxpose.xlu0.b32.start.end [1/1] (short) (narrow) %v1068_v62, 8  ;;  %v1137_v40 = vcombine.high %v1127_v30, %v5500_v3  ;;  %v1138_v47 = vcombine.high %v1134_v41, %v5500_v3  ;;  %v1178_v48 = vrot.slane %v1170_v44, %v5782_v43  ;;  %v1185_v28 = vrot.slane %v1171_v31, %v5782_v43 }
 0x33a   :  { %v1201_v51 = vrot.slane %v1187_v32, %v5782_v43  ;;  %v1194_v52 = vrot.slane %v1186_v49, %v5782_v43  ;;  %v993_v55 = vrot.slane %v985_v50, %v5782_v43  ;;  %v1000_v57 = vrot.slane %v986_v53, %v5782_v43 }
 0x33b   :  { %1526 = vxpose.xlu1.b32.start.end [1/1] (short) (narrow) %v1051_v63, 8  ;;  %v1202_v58 = vcombine.high %v1178_v48, %v5500_v3  ;;  %v1203_v60 = vcombine.high %v1185_v28, %v5500_v3 }
 0x33c   :  { %v1205_v54 = vcombine.high %v1201_v51, %v5500_v3  ;;  %v1003_v56 = vcombine.high %v993_v55, %v5500_v3  ;;  %v1004_v59 = vcombine.high %v1000_v57, %v5500_v3  ;;  %v1204_v61 = vcombine.high %v1194_v52, %v5500_v3 }
 0x33d   :  { %1558 = vxpose.xlu0.b32.start.end [1/1] (short) (narrow) %v1069_v2, 8 }
 0x33f   :  { %1590 = vxpose.xlu1.b32.start.end [1/1] (short) (narrow) %v1060_v4, 8 }
 0x341   :  { %1622 = vxpose.xlu0.b32.start.end [1/1] (short) (narrow) %v1070_v9, 8 }
 0x343   :  { %1654 = vxpose.xlu1.b32.start.end [1/1] (short) (narrow) %v1067_v10, 8 }
 0x345   :  { %1686 = vxpose.xlu0.b32.start.end [1/1] (short) (narrow) %v1071_v14, 8 }
 0x347   :  { %1718 = vxpose.xlu1.b32.start.end [1/1] (short) (narrow) %v1111_v15, 8 }
 0x349   :  { %1750 = vxpose.xlu0.b32.start.end [1/1] (short) (narrow) %v1135_v22, 8 }
 0x34b   :  { %1782 = vxpose.xlu1.b32.start.end [1/1] (short) (narrow) %v1118_v23, 8 }
 0x34d   :  { %1814 = vxpose.xlu0.b32.start.end [1/1] (short) (narrow) %v1136_v29, 8  ;;  %v5101_v29 = vld [vmem:[%s6145_s5] ss:$0 sm:$0xff] }
 0x34e   :  { %v600_v34 = vadd.f32 %v5101_v29, %v5763_v17 }
 0x34f   :  { %1846 = vxpose.xlu1.b32.start.end [1/1] (short) (narrow) %v1127_v30, 8 }
 0x351   :  { %1878 = vxpose.xlu0.b32.start.end [1/1] (short) (narrow) %v1137_v40, 8  ;;  %v611_v40 = vrot.slane %v600_v34, %v5761_v16 }
 0x353   :  { %1910 = vxpose.xlu1.b32.start.end [1/1] (short) (narrow) %v1134_v41, 8 }
 0x355   :  { %1942 = vxpose.xlu0.b32.start.end [1/1] (short) (narrow) %v1138_v47, 8 }
 0x357   :  { %1974 = vxpose.xlu1.b32.start.end [1/1] (short) (narrow) %v1178_v48, 8 }
 0x359   :  { %2038 = vxpose.xlu0.b32.start.end [1/1] (short) (narrow) %v1185_v28, 8 }
 0x35b   :  { %2102 = vxpose.xlu1.b32.start.end [1/1] (short) (narrow) %v1194_v52, 8 }
 0x35d   :  { %2198 = vxpose.xlu0.b32.start.end [1/1] (short) (narrow) %v1205_v54, 8 }
 0x35f   :  { %2166 = vxpose.xlu1.b32.start.end [1/1] (short) (narrow) %v1201_v51, 8  ;;  %v619_v51 = vcombine.high %v611_v40, %v611_v40 }
 0x361   :  { %1366 = vxpose.xlu0.b32.start.end [1/1] (short) (narrow) %v1003_v56, 8 }
 0x363   :  { %2006 = vxpose.xlu1.b32.start.end [1/1] (short) (narrow) %v1202_v58, 8 }
 0x365   :  { %1430 = vxpose.xlu0.b32.start.end [1/1] (short) (narrow) %v1004_v59, 8 }
 0x367   :  { %2070 = vxpose.xlu1.b32.start.end [1/1] (short) (narrow) %v1203_v60, 8 }
 0x36b   :  { %2134 = vxpose.xlu1.b32.start.end [1/1] (short) (narrow) %v1204_v61, 8 }
 0x36f   :  { %1334 = vxpose.xlu1.b32.start.end [1/1] (short) (narrow) %v993_v55, 8 }
 0x373   :  { %1398 = vxpose.xlu1.b32.start.end [1/1] (short) (narrow) %v1000_v57, 8 }
 0x3ab   :  { %v5839_v62 = vpop.trf.xlu1 }
 0x3ad   :  { %v5841_v63 = vpop.trf.xlu0 }
 0x3af   :  { %v5843_v0 = vpop.trf.xlu1 }
 0x3b0   :  { %v2230_v1 = vcombine.low %v5839_v62, %v5843_v0 }
 0x3b1   :  { %v5847_v2 = vpop.trf.xlu0 }
 0x3b2   :  { %v2238_v55 = vcombine.low %v5841_v63, %v5847_v2  ;;  %v824_v2 = vcombine.low %v611_v40, %v619_v51 }
 0x3b3   :  { %v1478_v4 = vpop.trf.xlu1 }
 0x3b5   :  { %v1510_v5 = vpop.trf.xlu0 }
 0x3b7   :  { %v1542_v6 = vpop.trf.xlu1 }
 0x3b8   :  { %v2280_v49 = vcombine.low %v1478_v4, %v1542_v6 }
 0x3b9   :  { %v1574_v8 = vpop.trf.xlu0 }
 0x3ba   :  { %v2288_v45 = vcombine.low %v1510_v5, %v1574_v8  ;;  %v604_v5 = vcombine.high %v600_v34, %v600_v34  ;;  %v2287_v6 = vrot.slane %v2280_v49, %v5761_v16 }
 0x3bb   :  { %v1606_v9 = vpop.trf.xlu1 }
 0x3bc   :  { %v2295_v56 = vrot.slane %v2288_v45, %v5761_v16 }
 0x3bd   :  { %v1638_v10 = vpop.trf.xlu0 }
 0x3bf   :  { %v1670_v11 = vpop.trf.xlu1 }
 0x3c0   :  { %v2296_v32 = vcombine.low %v1606_v9, %v1670_v11 }
 0x3c1   :  { %v1702_v12 = vpop.trf.xlu0 }
 0x3c2   :  { %v2304_v41 = vcombine.low %v1638_v10, %v1702_v12  ;;  %v2303_v59 = vrot.slane %v2296_v32, %v5761_v16  ;;  %v2245_v12 = vrot.slane %v2238_v55, %v5761_v16 }
 0x3c3   :  { %v1734_v13 = vpop.trf.xlu1 }
 0x3c4   :  { %v2311_v52 = vrot.slane %v2304_v41, %v5761_v16 }
 0x3c5   :  { %v1766_v14 = vpop.trf.xlu0 }
 0x3c6   :  { %v2320_v11 = vcombine.low %v2303_v59, %v2311_v52 }
 0x3c7   :  { %v1798_v15 = vpop.trf.xlu1 }
 0x3c8   :  { %v2330_v46 = vcombine.low %v1734_v13, %v1798_v15  ;;  %v2312_v13 = vcombine.low %v2287_v6, %v2295_v56 }
 0x3c9   :  { %v1830_v18 = vpop.trf.xlu0 }
 0x3ca   :  { %v2338_v37 = vcombine.low %v1766_v14, %v1830_v18  ;;  %v2337_v57 = vrot.slane %v2330_v46, %v5761_v16  ;;  %v2319_v34 = vrot.slane %v2312_v13, %v5782_v43 }
 0x3cb   :  { %v1862_v19 = vpop.trf.xlu1 }
 0x3cc   :  { %v2345_v17 = vrot.slane %v2338_v37, %v5761_v16 }
 0x3cd   :  { %v1894_v20 = vpop.trf.xlu0 }
 0x3ce   :  { %v2362_v8 = vcombine.low %v2337_v57, %v2345_v17 }
 0x3cf   :  { %v1926_v21 = vpop.trf.xlu1 }
 0x3d0   :  { %v2346_v38 = vcombine.low %v1862_v19, %v1926_v21  ;;  %v2237_v21 = vrot.slane %v2230_v1, %v5761_v16 }
 0x3d1   :  { %v1958_v23 = vpop.trf.xlu0 }
 0x3d2   :  { %v2354_v36 = vcombine.low %v1894_v20, %v1958_v23  ;;  %v2353_v50 = vrot.slane %v2346_v38, %v5761_v16  ;;  %v618_v20 = vrot.slane %v604_v5, %v5761_v16 }
 0x3d3   :  { %v1990_v22 = vpop.trf.xlu1 }
 0x3d4   :  { %v2361_v31 = vrot.slane %v2354_v36, %v5761_v16  ;;  %v840_v0 = vrot.slane %v618_v20, %v5782_v43 }
 0x3d5   :  { %v2054_v26 = vpop.trf.xlu0 }
 0x3d6   :  { %v2380_v42 = vcombine.low %v1990_v22, %v2054_v26  ;;  %v2370_v58 = vcombine.low %v2353_v50, %v2361_v31  ;;  %v2369_v22 = vrot.slane %v2362_v8, %v5782_v43 }
 0x3d7   :  { %v2118_v25 = vpop.trf.xlu1 }
 0x3d8   :  { %v2387_v53 = vrot.slane %v2380_v42, %v5761_v16  ;;  %v2377_v14 = vrot.slane %v2370_v58, %v5782_v43 }
 0x3d9   :  { %v2214_v33 = vpop.trf.xlu0 }
 0x3da   :  { %v2378_v36 = vcombine.low %v2369_v22, %v2377_v14  ;;  %v2379_v62 = vcombine.high %v2369_v22, %v2377_v14 }
 0x3db   :  { %v2182_v27 = vpop.trf.xlu1 }
 0x3dc   :  { %v2396_v35 = vcombine.low %v2118_v25, %v2182_v27  ;;  %v2327_v25 = vrot.slane %v2320_v11, %v5782_v43 }
 0x3dd   :  { %v1382_v47 = vpop.trf.xlu0 }
 0x3de   :  { %v2403_v60 = vrot.slane %v2396_v35, %v5761_v16  ;;  %v2329_v40 = vcombine.high %v2319_v34, %v2327_v25 }
 0x3df   :  { %v2022_v30 = vpop.trf.xlu1 }
 0x3e1   :  { %v1446_v9 = vpop.trf.xlu0 }
 0x3e2   :  { %v2254_v19 = vcombine.low %v1382_v47, %v1446_v9 }
 0x3e3   :  { %v2086_v39 = vpop.trf.xlu1 }
 0x3e4   :  { %v2388_v44 = vcombine.low %v2022_v30, %v2086_v39  ;;  %v831_v30 = vrot.slane %v824_v2, %v5782_v43  ;;  %v2261_v37 = vrot.slane %v2254_v19, %v5761_v16  ;;  %v2328_v39 = vcombine.low %v2319_v34, %v2327_v25 }
 0x3e6   :  { %v2395_v48 = vrot.slane %v2388_v44, %v5761_v16  ;;  %v2432_v41 = vcombine.low %v831_v30, %v840_v0  ;;  %v5108_v42 = vcombine.high %v831_v30, %v840_v0 }
 0x3e7   :  { %v2150_v28 = vpop.trf.xlu1 }
 0x3e8   :  { %v2404_v54 = vcombine.low %v2150_v28, %v2214_v33  ;;  %v2412_v61 = vcombine.low %v2387_v53, %v2395_v48  ;;  %v2262_v33 = vcombine.low %v2237_v21, %v2245_v12  ;;  %v2439_v47 = vrot.slane %v2432_v41, %v5761_v16  ;;  %v5105_v53 = vld [vmem:[%s6146_s9] ss:$0 sm:$0xff] }
 0x3e9   :  { %v2521_v32 = vrot.slane %v5108_v42, %v5761_v16 }
 0x3ea   :  { %v2411_v4 = vrot.slane %v2404_v54, %v5761_v16  ;;  %v2419_v15 = vrot.slane %v2412_v61, %v5782_v43  ;;  %v2269_v44 = vrot.slane %v2262_v33, %v5782_v43  ;;  %v801_v54 = vadd.f32 %v5105_v53, %v5766_v24 }
 0x3eb   :  { %v1350_v10 = vpop.trf.xlu1 }
 0x3ec   :  { %v2420_v63 = vcombine.low %v2403_v60, %v2411_v4  ;;  %v812_v55 = vrot.slane %v801_v54, %v5761_v16  ;;  %v805_v57 = vcombine.high %v801_v54, %v801_v54 }
 0x3ee   :  { %v2427_v18 = vrot.slane %v2420_v63, %v5782_v43  ;;  %v820_v56 = vcombine.high %v812_v55, %v812_v55  ;;  %v819_v58 = vrot.slane %v805_v57, %v5761_v16 }
 0x3ef   :  { %v1414_v23 = vpop.trf.xlu1 }
 0x3f0   :  { %v2246_v26 = vcombine.low %v1350_v10, %v1414_v23  ;;  %v2428_v27 = vcombine.low %v2419_v15, %v2427_v18  ;;  %v2429_v29 = vcombine.high %v2419_v15, %v2427_v18 }
 0x3f2   :  { %v2253_v38 = vrot.slane %v2246_v26, %v5761_v16  ;;  %5279 = vmatpush3.msra.mxu1 %v2428_v27  ;;  %5290 = vmatpush3.msra.mxu0 %v2429_v29 }
 0x3f3   :  { %5280 = vmatprep.subr.mxu1 %v5500_v3  ;;  %5291 = vmatprep.subr.mxu0 %v5500_v3 }
 0x3f4   :  { %v2270_v1 = vcombine.low %v2253_v38, %v2261_v37  ;;  %5281 = vmatpush3.msra.mxu1 %v2378_v36  ;;  %5292 = vmatpush3.msra.mxu0 %v2379_v62 }
 0x3f5   :  { %5282 = vmatprep.subr.mxu1 %v5500_v3  ;;  %5293 = vmatprep.subr.mxu0 %v5500_v3 }
 0x3f6   :  { %v2277_v45 = vrot.slane %v2270_v1, %v5782_v43  ;;  %5283 = vmatpush3.msra.mxu1 %v2328_v39  ;;  %5294 = vmatpush3.msra.mxu0 %v2329_v40 }
 0x3f7   :  { %5284 = vmatprep.subr.mxu1 %v5500_v3  ;;  %5295 = vmatprep.subr.mxu0 %v5500_v3 }
 0x3f8   :  { %v2278_v46 = vcombine.low %v2269_v44, %v2277_v45  ;;  %v2279_v31 = vcombine.high %v2269_v44, %v2277_v45 }
 0x3fa   :  { %5285 = vmatpush3.msra.mxu1 %v2278_v46  ;;  %5296 = vmatpush3.msra.mxu0 %v2279_v31 }
 0x3fb   :  { %5287 = vmatmul.mubr.msk.f32.vlgmr.msra.gmra.mxu1 %vm341_vm8, %v2439_v47  ;;  %5298 = vmatmul.mubr.msk.f32.vlgmr.msra.gmra.mxu0 %vm341_vm8, %v2521_v32 }
 0x4bb   :  { %v2508_v35 = vpop.f32.mrf.mxu1  ;;  %v2590_v48 = vpop.f32.mrf.mxu0 }
 0x4bc   :  { %v5894_v49 = vmul.f32 0.17677669, %v2508_v35  ;;  %v5896_v17 = vmul.f32 0.17677669, %v2590_v48 }
 0x4bd   :  { %v5288_v50 = vpop.f32.mrf.mxu1  ;;  %v5299_v28 = vpop.f32.mrf.mxu0 }
 0x4be   :  { %v2597_v51 = vsel %vm2596_vm10, %v5894_v49, -inf  ;;  %v2600_v52 = vsel %vm2596_vm10, %v5896_v17, -inf }
 0x4bf   :  { %2598 = vmax.xlane.f32.xlu1 %v2597_v51  ;;  %2601 = vmax.xlane.f32.xlu0 %v2600_v52 }
 0x4ec   :  { %2619 = vxpose.xlu0.b32.start.end [1/1] (short) (narrow) %v812_v55, 32 }
 0x4f2   :  { %2651 = vxpose.xlu1.b32.start.end [1/1] (short) (narrow) %v820_v56, 32 }
 0x4f9   :  { %2683 = vxpose.xlu0.b32.start.end [1/1] (short) (narrow) %v819_v58, 32 }
 0x548   :  { %v5906_v59 = vpop.xlane.xlu0 %2601  ;;  %v5910_v5 = vpop.xlane.xlu1 %2598 }
 0x568   :  { %v2635_v60 = vpop.trf.xlu0 }
 0x56c   :  { %v2636_v61 = vpop.trf.xlu0 }
 0x56e   :  { %v2667_v24 = vpop.trf.xlu1 }
 0x56f   :  { %v2731_v10 = vcombine.high %v2667_v24, %v5500_v3  ;;  %v2738_v11 = vrot.slane %v2667_v24, %v5761_v16 }
 0x570   :  { %v5908_v4 = vpop.trf.xlu0 }
 0x571   :  { %v2745_v12 = vrot.slane %v2731_v10, %v5761_v16 }
 0x572   :  { %v2668_v25 = vpop.trf.xlu1 }
 0x573   :  { %v2805_v27 = vrot.slane %v2668_v25, %v5761_v16  ;;  %v2798_v34 = vcombine.high %v2668_v25, %v5500_v3 }
 0x574   :  { %v5912_v6 = vpop.trf.xlu0 }
 0x575   :  { %v2812_v0 = vrot.slane %v2798_v34, %v5761_v16 }
 0x576   :  { %v2669_v47 = vpop.trf.xlu1 }
 0x577   :  { %v2872_v35 = vrot.slane %v2669_v47, %v5761_v16  ;;  %v2865_v51 = vcombine.high %v2669_v47, %v5500_v3 }
 0x578   :  { %v2699_v8 = vpop.trf.xlu0 }
 0x579   :  { %v2715_v9 = vcombine.low %v2635_v60, %v2699_v8  ;;  %v2716_v63 = vcombine.high %v2635_v60, %v2699_v8  ;;  %v2879_v56 = vrot.slane %v2865_v51, %v5761_v16 }
 0x57b   :  { %v2723_v2 = vrot.slane %v2715_v9, %v5761_v16  ;;  %v2730_v13 = vrot.slane %v2716_v63, %v5761_v16 }
 0x57c   :  { %v2700_v15 = vpop.trf.xlu0 }
 0x57d   :  { %v2746_v14 = vcombine.low %v2723_v2, %v2738_v11  ;;  %v2747_v19 = vcombine.high %v2723_v2, %v2738_v11  ;;  %v2762_v20 = vcombine.low %v2730_v13, %v2745_v12  ;;  %v2782_v21 = vcombine.low %v2636_v61, %v2700_v15  ;;  %v2670_v11 = vpop.trf.xlu1 }
 0x57e   :  { %v2763_v26 = vcombine.high %v2730_v13, %v2745_v12  ;;  %v2783_v36 = vcombine.high %v2636_v61, %v2700_v15  ;;  %v2939_v2 = vrot.slane %v2670_v11, %v5761_v16  ;;  %v2932_v15 = vcombine.high %v2670_v11, %v5500_v3 }
 0x57f   :  { %v2754_v18 = vrot.slane %v2746_v14, %v5782_v43  ;;  %v2761_v23 = vrot.slane %v2747_v19, %v5782_v43  ;;  %v2790_v29 = vrot.slane %v2782_v21, %v5761_v16  ;;  %v2770_v30 = vrot.slane %v2762_v20, %v5782_v43 }
 0x580   :  { %v2777_v38 = vrot.slane %v2763_v26, %v5782_v43  ;;  %v2797_v1 = vrot.slane %v2783_v36, %v5761_v16  ;;  %v2701_v41 = vpop.trf.xlu0 }
 0x581   :  { %2983 = vxpose.xlu1.b32.start.end [1/1] (short) (narrow) %v2754_v18, 8  ;;  %v2778_v22 = vcombine.high %v2754_v18, %v5500_v3  ;;  %v2779_v33 = vcombine.high %v2761_v23, %v5500_v3  ;;  %v2813_v37 = vcombine.low %v2790_v29, %v2805_v27  ;;  %v2780_v62 = vcombine.high %v2770_v30, %v5500_v3 }
 0x582   :  { %v2814_v39 = vcombine.high %v2790_v29, %v2805_v27  ;;  %v2781_v42 = vcombine.high %v2777_v38, %v5500_v3  ;;  %v2829_v44 = vcombine.low %v2797_v1, %v2812_v0  ;;  %v2849_v45 = vcombine.low %v5908_v4, %v2701_v41 }
 0x583   :  { %3015 = vxpose.xlu0.b32.start.end [1/1] (short) (narrow) %v2778_v22, 8  ;;  %v2821_v40 = vrot.slane %v2813_v37, %v5782_v43  ;;  %v2830_v32 = vcombine.high %v2797_v1, %v2812_v0  ;;  %v2850_v52 = vcombine.high %v5908_v4, %v2701_v41  ;;  %v2946_v22 = vrot.slane %v2932_v15, %v5761_v16 }
 0x584   :  { %v2828_v46 = vrot.slane %v2814_v39, %v5782_v43  ;;  %v2857_v48 = vrot.slane %v2849_v45, %v5761_v16  ;;  %v2837_v50 = vrot.slane %v2829_v44, %v5782_v43  ;;  %v2702_v61 = vpop.trf.xlu0  ;;  %v2604_v1 = vsub.f32 %v5896_v17, %v5906_v59 }
 0x585   :  { %3047 = vxpose.xlu1.b32.start.end [1/1] (short) (narrow) %v2761_v23, 8  ;;  %v2845_v31 = vcombine.high %v2821_v40, %v5500_v3  ;;  %v2844_v54 = vrot.slane %v2830_v32, %v5782_v43  ;;  %v2864_v57 = vrot.slane %v2850_v52, %v5761_v16  ;;  %v2916_v8 = vcombine.low %v5912_v6, %v2702_v61 }
 0x586   :  { %v2846_v28 = vcombine.high %v2828_v46, %v5500_v3  ;;  %v2880_v53 = vcombine.low %v2857_v48, %v2872_v35  ;;  %v2847_v55 = vcombine.high %v2837_v50, %v5500_v3  ;;  %v2881_v58 = vcombine.high %v2857_v48, %v2872_v35 }
 0x587   :  { %3111 = vxpose.xlu0.b32.start.end [1/1] (short) (narrow) %v2770_v30, 8  ;;  %v2848_v24 = vcombine.high %v2844_v54, %v5500_v3  ;;  %v2896_v4 = vcombine.low %v2864_v57, %v2879_v56  ;;  %v2897_v63 = vcombine.high %v2864_v57, %v2879_v56  ;;  %v2924_v12 = vrot.slane %v2916_v8, %v5761_v16 }
 0x588   :  { %v2888_v60 = vrot.slane %v2880_v53, %v5782_v43  ;;  %v2895_v9 = vrot.slane %v2881_v58, %v5782_v43  ;;  %v2917_v18 = vcombine.high %v5912_v6, %v2702_v61  ;;  %v2607_v39 = vmul.f32 1.442695, %v2604_v1 }
 0x589   :  { %3079 = vxpose.xlu1.b32.start.end [1/1] (short) (narrow) %v2779_v33, 8  ;;  %v2904_v13 = vrot.slane %v2896_v4, %v5782_v43  ;;  %v2947_v19 = vcombine.low %v2924_v12, %v2939_v2  ;;  %v2911_v20 = vrot.slane %v2897_v63, %v5782_v43  ;;  %v2948_v25 = vcombine.high %v2924_v12, %v2939_v2 }
 0x58a   :  { %v2912_v10 = vcombine.high %v2888_v60, %v5500_v3  ;;  %v2913_v14 = vcombine.high %v2895_v9, %v5500_v3  ;;  %v2931_v23 = vrot.slane %v2917_v18, %v5761_v16 }
 0x58b   :  { %3175 = vxpose.xlu0.b32.start.end [1/1] (short) (narrow) %v2777_v38, 8  ;;  %v2914_v21 = vcombine.high %v2904_v13, %v5500_v3  ;;  %v2955_v26 = vrot.slane %v2947_v19, %v5782_v43  ;;  %v2915_v27 = vcombine.high %v2911_v20, %v5500_v3  ;;  %v2962_v6 = vrot.slane %v2948_v25, %v5782_v43 }
 0x58c   :  { %v2963_v29 = vcombine.low %v2931_v23, %v2946_v22  ;;  %v2964_v33 = vcombine.high %v2931_v23, %v2946_v22 }
 0x58d   :  { %3143 = vxpose.xlu1.b32.start.end [1/1] (short) (narrow) %v2780_v62, 8  ;;  %v2979_v30 = vcombine.high %v2955_v26, %v5500_v3  ;;  %v2980_v36 = vcombine.high %v2962_v6, %v5500_v3  ;;  %v2603_v62 = vsub.f32 %v5894_v49, %v5910_v5 }
 0x58e   :  { %v2971_v34 = vrot.slane %v2963_v29, %v5782_v43  ;;  %v2978_v37 = vrot.slane %v2964_v33, %v5782_v43 }
 0x58f   :  { %3239 = vxpose.xlu0.b32.start.end [1/1] (short) (narrow) %v2821_v40, 8  ;;  %v2605_v0 = vmul.f32 1.442695, %v2603_v62 }
 0x590   :  { %v2981_v38 = vcombine.high %v2971_v34, %v5500_v3  ;;  %v2982_v61 = vcombine.high %v2978_v37, %v5500_v3 }
 0x591   :  { %3207 = vxpose.xlu1.b32.start.end [1/1] (short) (narrow) %v2781_v42, 8  ;;  %5433 = vpow2.f32 %v2605_v0 }
 0x592   :  { %5435 = vpow2.f32 %v2607_v39 }
 0x593   :  { %3303 = vxpose.xlu0.b32.start.end [1/1] (short) (narrow) %v2828_v46, 8 }
 0x595   :  { %3271 = vxpose.xlu1.b32.start.end [1/1] (short) (narrow) %v2845_v31, 8 }
 0x597   :  { %3367 = vxpose.xlu0.b32.start.end [1/1] (short) (narrow) %v2837_v50, 8 }
 0x599   :  { %3335 = vxpose.xlu1.b32.start.end [1/1] (short) (narrow) %v2846_v28, 8 }
 0x59b   :  { %3431 = vxpose.xlu0.b32.start.end [1/1] (short) (narrow) %v2844_v54, 8 }
 0x59d   :  { %3399 = vxpose.xlu1.b32.start.end [1/1] (short) (narrow) %v2847_v55, 8 }
 0x59e   :  { %v5973_v40 = vpop.eup %5433 }
 0x59f   :  { %3495 = vxpose.xlu0.b32.start.end [1/1] (short) (narrow) %v2888_v60, 8  ;;  %v2609_v41 = vsel %vm2596_vm10, %v5973_v40, 0.0  ;;  %v5977_v42 = vpop.eup %5435 }
 0x5a0   :  { %v2612_v44 = vsel %vm2596_vm10, %v5977_v42, 0.0 }
 0x5a1   :  { %3463 = vxpose.xlu1.b32.start.end [1/1] (short) (narrow) %v2848_v24, 8 }
 0x5a3   :  { %3559 = vxpose.xlu0.b32.start.end [1/1] (short) (narrow) %v2895_v9, 8 }
 0x5a5   :  { %3527 = vxpose.xlu1.b32.start.end [1/1] (short) (narrow) %v2912_v10, 8 }
 0x5a7   :  { %3623 = vxpose.xlu0.b32.start.end [1/1] (short) (narrow) %v2904_v13, 8 }
 0x5a9   :  { %3591 = vxpose.xlu1.b32.start.end [1/1] (short) (narrow) %v2913_v14, 8 }
 0x5ab   :  { %3687 = vxpose.xlu0.b32.start.end [1/1] (short) (narrow) %v2911_v20, 8 }
 0x5ad   :  { %3655 = vxpose.xlu1.b32.start.end [1/1] (short) (narrow) %v2914_v21, 8 }
 0x5af   :  { %3751 = vxpose.xlu0.b32.start.end [1/1] (short) (narrow) %v2955_v26, 8 }
 0x5b1   :  { %3719 = vxpose.xlu1.b32.start.end [1/1] (short) (narrow) %v2915_v27, 8 }
 0x5b3   :  { %3815 = vxpose.xlu0.b32.start.end [1/1] (short) (narrow) %v2962_v6, 8 }
 0x5b5   :  { %3783 = vxpose.xlu1.b32.start.end [1/1] (short) (narrow) %v2979_v30, 8 }
 0x5b7   :  { %3879 = vxpose.xlu0.b32.start.end [1/1] (short) (narrow) %v2971_v34, 8 }
 0x5b9   :  { %3847 = vxpose.xlu1.b32.start.end [1/1] (short) (narrow) %v2980_v36, 8 }
 0x5bb   :  { %3943 = vxpose.xlu0.b32.start.end [1/1] (short) (narrow) %v2978_v37, 8 }
 0x5bd   :  { %3911 = vxpose.xlu1.b32.start.end [1/1] (short) (narrow) %v2981_v38, 8 }
 0x5e4   :  { %2610 = vadd.xlane.f32.xlu1 %v2609_v41 }
 0x5e8   :  { %2613 = vadd.xlane.f32.xlu1 %v2612_v44 }
 0x5fd   :  { %v2999_v49 = vpop.trf.xlu1 }
 0x5ff   :  { %v3031_v5 = vpop.trf.xlu0 }
 0x601   :  { %v3063_v45 = vpop.trf.xlu1 }
 0x602   :  { %v4007_v59 = vcombine.low %v2999_v49, %v3063_v45 }
 0x603   :  { %v3127_v46 = vpop.trf.xlu0 }
 0x604   :  { %v4014_v35 = vrot.slane %v4007_v59, %v5761_v16 }
 0x605   :  { %v3095_v17 = vpop.trf.xlu1 }
 0x606   :  { %v4015_v31 = vcombine.low %v3031_v5, %v3095_v17 }
 0x607   :  { %v3191_v47 = vpop.trf.xlu0 }
 0x608   :  { %v4022_v48 = vrot.slane %v4015_v31, %v5761_v16  ;;  %v4023_v50 = vcombine.low %v3127_v46, %v3191_v47 }
 0x609   :  { %v3159_v32 = vpop.trf.xlu1 }
 0x60a   :  { %v4039_v51 = vcombine.low %v4014_v35, %v4022_v48  ;;  %v4030_v53 = vrot.slane %v4023_v50, %v5761_v16 }
 0x60b   :  { %v3255_v11 = vpop.trf.xlu0 }
 0x60c   :  { %v4046_v55 = vrot.slane %v4039_v51, %v5782_v43 }
 0x60d   :  { %v3223_v28 = vpop.trf.xlu1 }
 0x60e   :  { %v4031_v52 = vcombine.low %v3159_v32, %v3223_v28 }
 0x60f   :  { %v3319_v2 = vpop.trf.xlu0 }
 0x610   :  { %v4038_v54 = vrot.slane %v4031_v52, %v5761_v16  ;;  %v4057_v29 = vcombine.low %v3255_v11, %v3319_v2 }
 0x611   :  { %v3287_v24 = vpop.trf.xlu1 }
 0x612   :  { %v4047_v56 = vcombine.low %v4030_v53, %v4038_v54  ;;  %v4064_v0 = vrot.slane %v4057_v29, %v5761_v16 }
 0x613   :  { %v3383_v13 = vpop.trf.xlu0 }
 0x614   :  { %v4054_v57 = vrot.slane %v4047_v56, %v5782_v43 }
 0x615   :  { %v3351_v4 = vpop.trf.xlu1 }
 0x616   :  { %v4055_v58 = vcombine.low %v4046_v55, %v4054_v57  ;;  %v4056_v60 = vcombine.high %v4046_v55, %v4054_v57  ;;  %v4065_v27 = vcombine.low %v3287_v24, %v3351_v4 }
 0x617   :  { %v3447_v15 = vpop.trf.xlu0 }
 0x618   :  { %5302 = vmatprep.mubr.msk.f32.mxu1 %vm4207_vm11, %v4055_v58  ;;  %5310 = vmatprep.mubr.msk.f32.mxu0 %vm4207_vm11, %v4056_v60  ;;  %v4073_v30 = vcombine.low %v3383_v13, %v3447_v15  ;;  %v4072_v62 = vrot.slane %v4065_v27, %v5761_v16 }
 0x619   :  { %v3415_v8 = vpop.trf.xlu1 }
 0x61a   :  { %v4080_v39 = vrot.slane %v4073_v30, %v5761_v16  ;;  %v4089_v45 = vcombine.low %v4064_v0, %v4072_v62  ;;  %v4503_v30 = vld [vmem:[%s6147_s13] sm:$0xff] }
 0x61b   :  { %3975 = vxpose.xlu1.b32.start.end [1/1] (short) (narrow) %v2982_v61, 8  ;;  %v3511_v19 = vpop.trf.xlu0 }
 0x61c   :  { %v4096_v47 = vrot.slane %v4089_v45, %v5782_v43  ;;  %v5120_v45 = vld [vmem:[%s6148_s17] ss:$0 sm:$0xff] }
 0x61d   :  { %v3479_v9 = vpop.trf.xlu1 }
 0x61e   :  { %v4081_v6 = vcombine.low %v3415_v8, %v3479_v9 }
 0x61f   :  { %v3575_v21 = vpop.trf.xlu0 }
 0x620   :  { %v4107_v34 = vcombine.low %v3511_v19, %v3575_v21  ;;  %v4088_v1 = vrot.slane %v4081_v6, %v5761_v16  ;;  %v4504_v6 = vld [vmem:[%s6147_s13 + $0x8] sm:$0xff] }
 0x621   :  { %v3543_v10 = vpop.trf.xlu1 }
 0x622   :  { %v4114_v44 = vrot.slane %v4107_v34, %v5761_v16  ;;  %v4097_v46 = vcombine.low %v4080_v39, %v4088_v1 }
 0x623   :  { %v3639_v23 = vpop.trf.xlu0 }
 0x624   :  { %v4104_v32 = vrot.slane %v4097_v46, %v5782_v43 }
 0x625   :  { %v3607_v63 = vpop.trf.xlu1 }
 0x626   :  { %v4115_v33 = vcombine.low %v3543_v10, %v3607_v63  ;;  %v4105_v51 = vcombine.low %v4096_v47, %v4104_v32  ;;  %v4106_v54 = vcombine.high %v4096_v47, %v4104_v32 }
 0x627   :  { %v3703_v26 = vpop.trf.xlu0 }
 0x628   :  { %v4123_v37 = vcombine.low %v3639_v23, %v3703_v26  ;;  %v4122_v41 = vrot.slane %v4115_v33, %v5761_v16  ;;  %v4505_v26 = vld [vmem:[%s6147_s13 + $0x10] sm:$0xff] }
 0x629   :  { %v3671_v12 = vpop.trf.xlu1 }
 0x62a   :  { %v4130_v5 = vrot.slane %v4123_v37, %v5761_v16  ;;  %v4139_v17 = vcombine.low %v4114_v44, %v4122_v41 }
 0x62c   :  { %v4146_v48 = vrot.slane %v4139_v17, %v5782_v43 }
 0x62d   :  { %v3735_v14 = vpop.trf.xlu1 }
 0x62e   :  { %v4131_v36 = vcombine.low %v3671_v12, %v3735_v14 }
 0x630   :  { %v4138_v49 = vrot.slane %v4131_v36, %v5761_v16 }
 0x631   :  { %v3799_v18 = vpop.trf.xlu1 }
 0x632   :  { %v4147_v59 = vcombine.low %v4130_v5, %v4138_v49 }
 0x634   :  { %v4154_v50 = vrot.slane %v4147_v59, %v5782_v43 }
 0x635   :  { %v3863_v20 = vpop.trf.xlu1 }
 0x636   :  { %v4155_v53 = vcombine.low %v4146_v48, %v4154_v50  ;;  %v4156_v55 = vcombine.high %v4146_v48, %v4154_v50  ;;  %v4165_v57 = vcombine.low %v3799_v18, %v3863_v20 }
 0x638   :  { %v4172_v61 = vrot.slane %v4165_v57, %v5761_v16  ;;  %v4731_v57 = vld [vmem:[%s6150_s25 + $0x48] sm:$0xff] }
 0x639   :  { %v5990_v22 = vpop.trf.xlu1 }
 0x66d   :  { %v2611_v25 = vpop.xlane.xlu1 %2610 }
 0x66e   :  { %5437 = vrcp.f32 %v2611_v25 }
 0x671   :  { %v2614_v38 = vpop.xlane.xlu1 %2613 }
 0x672   :  { %5439 = vrcp.f32 %v2614_v38 }
 0x67b   :  { %v5438_v31 = vpop.eup %5437 }
 0x67c   :  { %v2617_v35 = vmul.f32 %v5438_v31, %v5973_v40  ;;  %v3767_v40 = vpop.trf.xlu0 }
 0x67e   :  { %5300 = vmatprep.subr.msk.mxu1 %vm4207_vm11, %v2617_v35 }
 0x67f   :  { %v5440_v28 = vpop.eup %5439  ;;  %5301 = vmatpush3.xpose.msk.msra.mxu1 %vm4207_vm11, %v2617_v35 }
 0x680   :  { %v2618_v52 = vmul.f32 %v5440_v28, %v5977_v42  ;;  %5316 = vmatprep.subr.mxu1 %v5500_v3  ;;  %v3831_v42 = vpop.trf.xlu0  ;;  %v4640_v28 = vld [vmem:[%s6149_s21 + $0x18] sm:$0xff] }
 0x681   :  { %v4157_v58 = vcombine.low %v3767_v40, %v3831_v42  ;;  %v4736_v40 = vld [vmem:[%s6150_s25 + $0x70] sm:$0xff]  ;;  %v4733_v42 = vld [vmem:[%s6150_s25 + $0x58] sm:$0xff] }
 0x682   :  { %5303 = vmatmul.mubr.msk.f32.vlgmr.msra.gmra.mxu1 %vm4207_vm11, %v4105_v51  ;;  %5308 = vmatprep.subr.msk.mxu0 %vm4207_vm11, %v2618_v52  ;;  %v4639_v51 = vld [vmem:[%s6149_s21 + $0x10] sm:$0xff] }
 0x683   :  { %5305 = vmatprep.mubr.msk.f32.mxu1 %vm4207_vm11, %v4155_v53  ;;  %5309 = vmatpush3.xpose.msk.msra.mxu0 %vm4207_vm11, %v2618_v52  ;;  %v4164_v24 = vrot.slane %v4157_v58, %v5761_v16  ;;  %v4637_v52 = vld [vmem:[%s6149_s21] sm:$0xff]  ;;  %v4737_v53 = vld [vmem:[%s6150_s25 + $0x78] sm:$0xff] }
 0x684   :  { %5327 = vmatprep.subr.mxu0 %v5500_v3  ;;  %v3895_v56 = vpop.trf.xlu0  ;;  %v4730_v58 = vld [vmem:[%s6150_s25 + $0x40] sm:$0xff] }
 0x685   :  { %v4189_v10 = vcombine.low %v4164_v24, %v4172_v61  ;;  %v4728_v61 = vld [vmem:[%s6150_s25 + $0x30] sm:$0xff]  ;;  %v4727_v24 = vld [vmem:[%s6150_s25 + $0x28] sm:$0xff] }
 0x686   :  { %5311 = vmatmul.mubr.msk.f32.vlgmr.msra.gmra.mxu0 %vm4207_vm11, %v4106_v54  ;;  %v4735_v54 = vld [vmem:[%s6150_s25 + $0x68] sm:$0xff] }
 0x687   :  { %5313 = vmatprep.mubr.msk.f32.mxu0 %vm4207_vm11, %v4156_v55  ;;  %v4196_v12 = vrot.slane %v4189_v10, %v5782_v43  ;;  %5328 = vmatpush3.msra.mxu0 %v4640_v28  ;;  %v4734_v55 = vld [vmem:[%s6150_s25 + $0x60] sm:$0xff] }
 0x688   :  { %v3959_v60 = vpop.trf.xlu0  ;;  %5329 = vmatprep.subr.mxu0 %v5500_v3 }
 0x689   :  { %v4173_v4 = vcombine.low %v3895_v56, %v3959_v60  ;;  %5330 = vmatpush3.msra.mxu0 %v4639_v51  ;;  %v4732_v56 = vld [vmem:[%s6150_s25 + $0x50] sm:$0xff]  ;;  %v4729_v60 = vld [vmem:[%s6150_s25 + $0x38] sm:$0xff] }
 0x68a   :  { %5331 = vmatprep.subr.mxu0 %v5500_v3 }
 0x68b   :  { %v4180_v11 = vrot.slane %v4173_v4, %v5761_v16  ;;  %v4726_v4 = vld [vmem:[%s6150_s25 + $0x20] sm:$0xff] }
 0x697   :  { %v3991_v8 = vpop.trf.xlu1 }
 0x698   :  { %v4181_v9 = vcombine.low %v5990_v22, %v3991_v8  ;;  %v4506_v22 = vld [vmem:[%s6147_s13 + $0x18] sm:$0xff] }
 0x699   :  { %5317 = vmatpush3.msra.mxu1 %v4506_v22  ;;  %v4725_v8 = vld [vmem:[%s6150_s25 + $0x18] sm:$0xff] }
 0x69a   :  { %v4188_v63 = vrot.slane %v4181_v9, %v5761_v16  ;;  %5318 = vmatprep.subr.mxu1 %v5500_v3 }
 0x69b   :  { %5319 = vmatpush3.msra.mxu1 %v4505_v26 }
 0x69c   :  { %v4197_v2 = vcombine.low %v4180_v11, %v4188_v63  ;;  %5320 = vmatprep.subr.mxu1 %v5500_v3 }
 0x69d   :  { %5321 = vmatpush3.msra.mxu1 %v4504_v6 }
 0x69e   :  { %v4204_v13 = vrot.slane %v4197_v2, %v5782_v43  ;;  %5322 = vmatprep.subr.mxu1 %v5500_v3  ;;  %v5122_v2 = vld [vmem:[%s6151_s29] ss:$0 sm:$0xff] }
 0x69f   :  { %5323 = vmatpush3.msra.mxu1 %v4503_v30 }
 0x6a0   :  { %v4205_v14 = vcombine.low %v4196_v12, %v4204_v13  ;;  %v4206_v15 = vcombine.high %v4196_v12, %v4204_v13  ;;  %5338 = vmatprep.subr.mxu1 %v5500_v3  ;;  %v5123_v13 = vld [vmem:[%s6152_s3] ss:$0 sm:$0xff] }
 0x6a2   :  { %5306 = vmatmul.mubr.msk.f32.gmra.mxu1 %vm4207_vm11, %v4205_v14  ;;  %5314 = vmatmul.mubr.msk.f32.gmra.mxu0 %vm4207_vm11, %v4206_v15 }
 0x6a3   :  { %5324 = vmatprep.mubr.msk.f32.mxu1 %vm5501_vm1, %v5500_v3  ;;  %5335 = vmatprep.mubr.msk.f32.mxu0 %vm5501_vm1, %v5500_v3 }
 0x742   :  { %v5304_v18 = vpop.f32.mrf.mxu1 }
 0x744   :  { %v4289_v19 = vpop.f32.mrf.mxu1 }
 0x745   :  { %4408 = vxpose.xlu0.b32.start [1/4] (short) (narrow) %v4289_v19, 8  ;;  %v4723_v19 = vld [vmem:[%s6150_s25 + $0x8] sm:$0xff] }
 0x746   :  { %v5312_v20 = vpop.f32.mrf.mxu0 }
 0x748   :  { %v4389_v21 = vpop.f32.mrf.mxu0 }
 0x749   :  { %4409 = vxpose.xlu0.b32.cont [2/4] (short) (narrow) %v5304_v18, 8  ;;  %4440 = vxpose.xlu1.b32.start [1/4] (short) (narrow) %v4389_v21, 8  ;;  %v4724_v18 = vld [vmem:[%s6150_s25 + $0x10] sm:$0xff]  ;;  %v5124_v21 = vld [vmem:[%s6153_s8] ss:$0 sm:$0xff] }
 0x74d   :  { %4441 = vxpose.xlu1.b32.cont [2/4] (short) (narrow) %v5312_v20, 8  ;;  %v4722_v20 = vld [vmem:[%s6150_s25] sm:$0xff] }
 0x762   :  { %v5307_v23 = vpop.f32.mrf.mxu1  ;;  %v5315_v25 = vpop.f32.mrf.mxu0 }
 0x764   :  { %v4299_v27 = vpop.f32.mrf.mxu1  ;;  %v4399_v29 = vpop.f32.mrf.mxu0 }
 0x765   :  { %4410 = vxpose.xlu0.b32.cont [3/4] (short) (narrow) %v4299_v27, 8  ;;  %4442 = vxpose.xlu1.b32.cont [3/4] (short) (narrow) %v4399_v29, 8  ;;  %v5126_v27 = vld [vmem:[%s6154_s14] ss:$0 sm:$0xff] }
 0x769   :  { %4411 = vxpose.xlu0.b32.end [4/4] (short) (narrow) %v5307_v23, 8  ;;  %4443 = vxpose.xlu1.b32.end [4/4] (short) (narrow) %v5315_v25, 8 }
 0x7d9   :  { %v4424_v33 = vpop.trf.xlu0  ;;  %v4456_v34 = vpop.trf.xlu1 }
 0x7da   :  { %v4478_v36 = vrot.slane %v4424_v33, %v5761_v16  ;;  %v4485_v37 = vrot.slane %v4456_v34, %v5761_v16 }
 0x7dc   :  { %v4486_v38 = vcombine.low %v4478_v36, %v4485_v37  ;;  %v4487_v62 = vcombine.high %v4478_v36, %v4485_v37 }
 0x7de   :  { %v4494_v0 = vrot.slane %v4486_v38, %v5782_v43  ;;  %v4502_v39 = vrot.slane %v4487_v62, %v5782_v43 }
 0x7e0   :  { %v4495_v1 = vcombine.high %v4494_v0, %v5500_v3  ;;  %v4531_v49 = vrot.slane %v4502_v39, %v5761_v16  ;;  %v4875_v39 = vld [vmem:[%s6155_s19 + $0x10] sm:$0xff] }
 0x7e2   :  { %v4517_v41 = vcombine.low %v4494_v0, %v4495_v1  ;;  %v4876_v1 = vld [vmem:[%s6155_s19 + $0x18] sm:$0xff] }
 0x7e4   :  { %v4524_v44 = vrot.slane %v4517_v41, %v5761_v16  ;;  %v4874_v41 = vld [vmem:[%s6155_s19 + $0x8] sm:$0xff] }
 0x7e6   :  { %v4532_v5 = vcombine.low %v4524_v44, %v4531_v49  ;;  %v4873_v44 = vld [vmem:[%s6155_s19] sm:$0xff] }
 0x7e8   :  { %5325 = vmatmul.mubr.msk.f32.vlgmr.msra.gmra.mxu1 %vm341_vm8, %v4532_v5 }
 0x7e9   :  { %5370 = vmatprep.mubr.msk.f32.mxu1 %vm5501_vm1, %v5500_v3  ;;  %5339 = vmatpush3.msra.mxu1 %v4737_v53 }
 0x7ea   :  { %5340 = vmatprep.subr.mxu1 %v5500_v3 }
 0x7eb   :  { %5341 = vmatpush3.msra.mxu1 %v4736_v40 }
 0x7ec   :  { %5342 = vmatprep.subr.mxu1 %v5500_v3 }
 0x7ed   :  { %5343 = vmatpush3.msra.mxu1 %v4735_v54  ;;  %v4961_v54 = vld [vmem:[%s5659_s4 + $0x18] sm:$0xff] }
 0x7ee   :  { %5344 = vmatprep.subr.mxu1 %v5500_v3 }
 0x7ef   :  { %5345 = vmatpush3.msra.mxu1 %v4734_v55  ;;  %v4959_v55 = vld [vmem:[%s5659_s4 + $0x8] sm:$0xff] }
 0x7f0   :  { %5346 = vmatprep.subr.mxu1 %v5500_v3 }
 0x7f1   :  { %5347 = vmatpush3.msra.mxu1 %v4733_v42  ;;  %v4958_v42 = vld [vmem:[%s5659_s4] sm:$0xff] }
 0x7f2   :  { %5348 = vmatprep.subr.mxu1 %v5500_v3 }
 0x7f3   :  { %5349 = vmatpush3.msra.mxu1 %v4732_v56  ;;  %v5129_v56 = vld [vmem:[%s5654_s27] ss:$0 sm:$0xff] }
 0x7f4   :  { %5350 = vmatprep.subr.mxu1 %v5500_v3 }
 0x7f5   :  { %5351 = vmatpush3.msra.mxu1 %v4731_v57 }
 0x7f6   :  { %5352 = vmatprep.subr.mxu1 %v5500_v3 }
 0x7f7   :  { %5353 = vmatpush3.msra.mxu1 %v4730_v58 }
 0x7f8   :  { %5354 = vmatprep.subr.mxu1 %v5500_v3 }
 0x7f9   :  { %5355 = vmatpush3.msra.mxu1 %v4729_v60 }
 0x7fa   :  { %5356 = vmatprep.subr.mxu1 %v5500_v3 }
 0x7fb   :  { %5357 = vmatpush3.msra.mxu1 %v4728_v61 }
 0x7fc   :  { %5358 = vmatprep.subr.mxu1 %v5500_v3 }
 0x7fd   :  { %5359 = vmatpush3.msra.mxu1 %v4727_v24  ;;  %v5131_v24 = vld [vmem:[%s5664_s30] ss:$0 sm:$0xff] }
 0x7fe   :  { %5360 = vmatprep.subr.mxu1 %v5500_v3 }
 0x7ff   :  { %5361 = vmatpush3.msra.mxu1 %v4726_v4 }
 0x800   :  { %5362 = vmatprep.subr.mxu1 %v5500_v3 }
 0x801   :  { %5363 = vmatpush3.msra.mxu1 %v4725_v8 }
 0x802   :  { %5364 = vmatprep.subr.mxu1 %v5500_v3 }
 0x803   :  { %5365 = vmatpush3.msra.mxu1 %v4724_v18 }
 0x804   :  { %5366 = vmatprep.subr.mxu1 %v5500_v3 }
 0x805   :  { %5367 = vmatpush3.msra.mxu1 %v4723_v19 }
 0x806   :  { %5368 = vmatprep.subr.mxu1 %v5500_v3 }
 0x807   :  { %5369 = vmatpush3.msra.mxu1 %v4722_v20 }
 0x8a8   :  { %v4601_v46 = vpop.f32.mrf.mxu1 }
 0x8a9   :  { %v4602_v17 = vadd.f32 %v5120_v45, %v4601_v46 }
 0x8aa   :  { %v5326_v59 = vpop.f32.mrf.mxu1 }
 0x8ab   :  { %v4605_v43 = vadd.f32 %v4602_v17, %v5738_v7  ;;  %v4638_v7 = vld [vmem:[%s6149_s21 + $0x8] sm:$0xff]  ;;  %v5127_v17 = vld [vmem:[%s6156_s24] ss:$0 sm:$0xff] }
 0x8ac   :  { %5332 = vmatpush3.msra.mxu0 %v4638_v7 }
 0x8ad   :  { %v4607_v31 = vsel %vm4606_vm12, %v4605_v43, 0.0  ;;  %5333 = vmatprep.subr.mxu0 %v5500_v3 }
 0x8ae   :  { %4608 = vadd.xlane.f32.xlu0 %v4607_v31  ;;  %5334 = vmatpush3.msra.mxu0 %v4637_v52 }
 0x8af   :  { %5373 = vmatprep.subr.mxu0 %v5500_v3 }
 0x937   :  { %v4609_v47 = vpop.xlane.xlu0 %4608 }
 0x938   :  { %v4611_v32 = vmul.f32 0.03125, %v4609_v47 }
 0x93a   :  { %v4612_v35 = vsub.f32 %v4605_v43, %v4611_v32  ;;  %v5128_v43 = vld [vmem:[%s6157_s6] ss:$0 sm:$0xff] }
 0x93c   :  { %v4613_v48 = vmul.f32 %v4612_v35, %v4612_v35 }
 0x93e   :  { %v4614_v50 = vsel %vm4606_vm12, %v4613_v48, 0.0 }
 0x93f   :  { %4615 = vadd.xlane.f32.xlu1 %v4614_v50 }
 0x9c8   :  { %v4616_v9 = vpop.xlane.xlu1 %4615 }
 0x9c9   :  { %v4617_v10 = vmul.f32 0.03125, %v4616_v9 }
 0x9cb   :  { %v4618_v11 = vadd.f32 1e-05, %v4617_v10 }
 0x9cd   :  { %5441 = vrsqrt.f32 %v4618_v11 }
 0x9da   :  { %v5442_v63 = vpop.eup %5441 }
 0x9db   :  { %v4620_v12 = vmul.f32 %v5442_v63, %v4612_v35 }
 0x9dd   :  { %v4628_v14 = vmul.f32 %v5122_v2, %v4620_v12 }
 0x9df   :  { %v4636_v15 = vadd.f32 %v5123_v13, %v4628_v14 }
 0x9e1   :  { %5336 = vmatmul.mubr.msk.f32.vlgmr.msra.gmra.mxu0 %vm341_vm8, %v4636_v15 }
 0x9e2   :  { %5381 = vmatprep.mubr.msk.f32.mxu0 %vm5501_vm1, %v5500_v3  ;;  %5374 = vmatpush3.msra.mxu0 %v4876_v1 }
 0x9e3   :  { %5375 = vmatprep.subr.mxu0 %v5500_v3 }
 0x9e4   :  { %5376 = vmatpush3.msra.mxu0 %v4875_v39 }
 0x9e5   :  { %5377 = vmatprep.subr.mxu0 %v5500_v3 }
 0x9e6   :  { %5378 = vmatpush3.msra.mxu0 %v4874_v41 }
 0x9e7   :  { %5379 = vmatprep.subr.mxu0 %v5500_v3 }
 0x9e8   :  { %5380 = vmatpush3.msra.mxu0 %v4873_v44 }
 0x9e9   :  { %5384 = vmatprep.subr.mxu0 %v5500_v3 }
 0xaa1   :  { %v4717_v22 = vpop.f32.mrf.mxu0 }
 0xaa2   :  { %v4718_v23 = vadd.f32 %v5124_v21, %v4717_v22 }
 0xaa3   :  { %v5337_v25 = vpop.f32.mrf.mxu0 }
 0xaa4   :  { %v4721_v26 = vmax.f32 %v4718_v23, 0.0 }
 0xaa6   :  { %5371 = vmatmul.mubr.f32.vlgmr.msra.gmra.mxu1 %v4721_v26 }
 0xb66   :  { %v4811_v29 = vpop.f32.mrf.mxu1 }
 0xb67   :  { %v4812_v6 = vadd.f32 %v5126_v27, %v4811_v29 }
 0xb68   :  { %v5372_v30 = vpop.f32.mrf.mxu1 }
 0xb69   :  { %v4815_v33 = vadd.f32 %v4812_v6, %v4636_v15 }
 0xb6b   :  { %v4816_v34 = vsel %vm4606_vm12, %v4815_v33, 0.0 }
 0xb6c   :  { %4817 = vadd.xlane.f32.xlu1 %v4816_v34 }
 0xbf5   :  { %v4818_v36 = vpop.xlane.xlu1 %4817 }
 0xbf6   :  { %v4819_v37 = vmul.f32 0.03125, %v4818_v36 }
 0xbf8   :  { %v4820_v38 = vsub.f32 %v4815_v33, %v4819_v37 }
 0xbfa   :  { %v4821_v62 = vmul.f32 %v4820_v38, %v4820_v38 }
 0xbfc   :  { %v4822_v0 = vsel %vm4606_vm12, %v4821_v62, 0.0 }
 0xbfd   :  { %4823 = vadd.xlane.f32.xlu0 %v4822_v0 }
 0xc86   :  { %v4824_v49 = vpop.xlane.xlu0 %4823 }
 0xc87   :  { %v4825_v5 = vmul.f32 0.03125, %v4824_v49 }
 0xc89   :  { %v4826_v45 = vadd.f32 1e-05, %v4825_v5 }
 0xc8b   :  { %5443 = vrsqrt.f32 %v4826_v45 }
 0xc98   :  { %v5444_v46 = vpop.eup %5443 }
 0xc99   :  { %v4828_v59 = vmul.f32 %v5444_v46, %v4820_v38 }
 0xc9b   :  { %v4836_v31 = vmul.f32 %v5127_v17, %v4828_v59 }
 0xc9d   :  { %v4844_v47 = vadd.f32 %v5128_v43, %v4836_v31 }
 0xc9f   :  { %v4846_v32 = vcombine.high %v4844_v47, %v4844_v47  ;;  %v4853_v35 = vrot.slane %v4844_v47, %v5761_v16 }
 0xca1   :  { %v4860_v48 = vrot.slane %v4846_v32, %v5761_v16  ;;  %v4861_v50 = vcombine.high %v4853_v35, %v4853_v35  ;;  %v4866_v28 = vsel %vm4865_vm13, %v4853_v35, 0.0  ;;  %v4960_v16 = vld [vmem:[%s5659_s4 + $0x10] sm:$0xff]  ;;  %s5447_s4 = scalar_lea.vmem %s5052_s22, 32 }
 0xca2   :  { %p5448_p0 = scmp.ne.s32.totalorder %s5052_s22, %s5447_s4  ;;  %p5453_p2 = scmp.lt.s32.totalorder %s5447_s4, %s5447_s4 }
 0xca3   :  { %v4867_v51 = vsel %vm4865_vm13, %v4861_v50, 0.0  ;;  %v4869_v52 = vsel %vm4865_vm13, %v4860_v48, 0.0 }
 0xca4   :  { %v4868_v7 = vadd.f32 %v4867_v51, %v4866_v28  ;;  %p5454_p3 = por %p5453_p2, %p5452_p1 }
 0xca6   :  { %v4870_v53 = vadd.f32 %v4869_v52, %v4868_v7  ;;  %p5455_p4 = pnand %p5454_p3, %p5448_p0 }
 0xca8   :  { %v4872_v40 = vmul.f32 0.33333334, %v4870_v53 }
 0xcaa   :  { %5382 = vmatmul.mubr.msk.f32.vlgmr.msra.gmra.mxu0 %vm341_vm8, %v4872_v40 }
 0xcab   :  { %5385 = vmatpush3.msra.mxu0 %v4961_v54  ;;  %5392 = vmatprep.mubr.msk.f32.mxu0 %vm5501_vm1, %v5500_v3 }
 0xcac   :  { %5386 = vmatprep.subr.mxu0 %v5500_v3 }
 0xcad   :  { %5387 = vmatpush3.msra.mxu0 %v4960_v16 }
 0xcae   :  { %5388 = vmatprep.subr.mxu0 %v5500_v3 }
 0xcaf   :  { %5389 = vmatpush3.msra.mxu0 %v4959_v55 }
 0xcb0   :  { %5390 = vmatprep.subr.mxu0 %v5500_v3 }
 0xcb1   :  { %5391 = vmatpush3.msra.mxu0 %v4958_v42 }
 0xd6a   :  { %v4953_v57 = vpop.f32.mrf.mxu0 }
 0xd6b   :  { %v4954_v58 = vadd.f32 %v5129_v56, %v4953_v57 }
 0xd6c   :  { %v5383_v60 = vpop.f32.mrf.mxu0 }
 0xd6d   :  { %v4957_v61 = vmax.f32 %v4954_v58, 0.0 }
 0xd6f   :  { %5393 = vmatmul.mubr.msk.f32.vlgmr.msra.gmra.mxu0 %vm341_vm8, %v4957_v61 }
 0xe2f   :  { %v5038_v4 = vpop.f32.mrf.mxu0 }
 0xe30   :  { %v5039_v8 = vadd.f32 %v5131_v24, %v5038_v4 }
 0xe31   :  { %v5394_v9 = vpop.f32.mrf.mxu0 }
 0xe32   :  { %5445 = vtanh.f32 %v5039_v8 }
 0xe3f   :  { %v5446_v10 = vpop.eup %5445 }
 0xe40   :  { %5044 = vst.msk [vmem:[#allocation2] sm:$0x3] %vm5043_vm14, %v5446_v10 }
 0xe41   :  { %5458 = shalt.err (!%p5455_p4)
}
 0xe42   :  { %5054 = dma.vmem_to_hbm [thread:$0]  %s5052_s22, 32, %s5669_s12, [#allocation3]  }
 0xe43   :  { %5467 = dma.done.wait [#allocation3], 32  }
 0xe44   :  { %5468 = vsyncadd [#allocation3], 4294967264 }
 0xe45   :  { %5058 = vsyncpa [#allocation3], 1 }

</bundles_post_ra>
